<compile_context>
chip_gen: v6e
topology: v6e:2x2x1
jax: 0.10.0
libtpu: 0.0.40
codegen_flags: <defaults>
</compile_context>

<pallas_src>
import functools

import numpy as np
import jax
import jax.numpy as jnp
from jax.experimental import pallas as pl
from jax.experimental.pallas import tpu as pltpu

_SQRT1_2 = 0.7071067811865476
_BN_EPS = 1e-5

# Abramowitz & Stegun 7.1.26 erf polynomial, |err| <= 1.5e-7.
_A1, _A2, _A3, _A4, _A5 = (0.254829592, -0.284496736, 1.421413741,
                           -1.453152027, 1.061405429)
_P = 0.3275911


def _gelu(x):
    """Exact (erf-based) GELU matching nn.GELU() default (approximate='none').

    erf(x/sqrt(2)) via the A&S polynomial; the 1/(1+p*z) divide uses the EUP
    approximate reciprocal plus one Newton step (error well below the polynomial's
    own 1.5e-7), freeing VALU slots.
    """
    ax = jnp.abs(x)
    d = 1.0 + (_P * _SQRT1_2) * ax
    t = pl.reciprocal(d, approx=True)        # EUP
    t = t * (2.0 - d * t)                    # one Newton-Raphson refinement
    poly = ((((_A5 * t + _A4) * t + _A3) * t + _A2) * t + _A1) * t
    erf_abs = 1.0 - poly * jnp.exp(-0.5 * x * x)
    erf_val = jnp.where(x < 0.0, -erf_abs, erf_abs)
    return 0.5 * x * (1.0 + erf_val)


def _conv_block_kernel(x_ref, t_ref, wt1_ref, bt1_ref, wf_ref, bf_ref,
                       w1_ref, g1_ref, beta1_ref, w2_ref, g2_ref, beta2_ref,
                       o_ref, *, B, C, L):
    f32 = jnp.float32
    inv_n = 1.0 / float(B * L)

    # ---- Time MLP (transposed layout so channels land on sublanes) --------------
    # hT[d, b] = gelu(W1[d, 0] * t[b] + b1[d]); scale1T[c, b] = (Wc@W2) hT + (Wc@b2+bc) + 1
    tT = t_ref[...]                                            # (1, B)
    hT = _gelu(wt1_ref[...] * tT + bt1_ref[...])               # (D, B)
    scale1T = (jnp.dot(wf_ref[...], hT, preferred_element_type=f32)
               + bf_ref[...] + 1.0)                            # (C, B), FiLM factor

    # ---- Load the activation once; halos are lane shifts on the value -----------
    x = x_ref[...]                                             # (B, C, L)
    zcol = jnp.zeros((B, C, 1), f32)

    def conv3(v, w_ref):
        # Conv1d(C, C, 3, padding=1) over the whole (B, C, L) slab.
        # taps[k][b, ci, l] == xpad[b, ci, l + k]  (zero-padded by one on each side).
        taps = (jnp.concatenate([zcol, v[:, :, :L - 1]], axis=2),   # x[l-1]
                v,                                                  # x[l]
                jnp.concatenate([v[:, :, 1:], zcol], axis=2))       # x[l+1]
        acc = None
        for ci in range(C):
            for k in range(3):
                # (C_out, 1) weight column * (B, 1, L) tap  ->  (B, C_out, L)
                term = w_ref[ci * 3 + k] * taps[k][:, ci:ci + 1, :]
                acc = term if acc is None else acc + term
        # Conv bias intentionally omitted: cancelled exactly by the training-mode BN
        # mean subtraction that follows.
        return acc

    def bn(y, g_ref, b_ref):
        # Training-mode BatchNorm1d, all channels at once: biased stats over (B, L).
        s1 = jnp.sum(y, axis=2, keepdims=True)                 # lane reduce   -> (B, C, 1)
        s2 = jnp.sum(y * y, axis=2, keepdims=True)
        s1 = jnp.sum(s1, axis=0, keepdims=True)                # leading reduce -> (1, C, 1)
        s2 = jnp.sum(s2, axis=0, keepdims=True)
        mu = s1 * inv_n
        var = jnp.maximum(s2 * inv_n - mu * mu, 0.0)
        return (y - mu) * (jax.lax.rsqrt(var + _BN_EPS) * g_ref[...]) + b_ref[...]

    # ---- stage 1: Conv1 -> BN1 -> GELU (stays in vregs, no scratch) --------------
    h1 = _gelu(bn(conv3(x, w1_ref), g1_ref, beta1_ref))        # (B, C, L)

    # ---- stage 2: Conv2 -> BN2 -> GELU -> FiLM, single full-slab store -----------
    y2 = _gelu(bn(conv3(h1, w2_ref), g2_ref, beta2_ref))       # (B, C, L)
    film = jnp.concatenate(
        [scale1T[:, b:b + 1].reshape(1, C, 1) for b in range(B)], axis=0)  # (B, C, 1)
    o_ref[...] = (y2 * film).astype(o_ref.dtype)


def _tile_padded_bytes(shape, itemsize=4):
    """VMEM footprint of one array with (8, 128) tile padding on the minor dims."""
    if len(shape) == 0:
        return itemsize
    if len(shape) == 1:
        shape = (1, shape[0])
    lead = int(np.prod(shape[:-2])) if len(shape) > 2 else 1
    sub = -(-shape[-2] // 8) * 8
    lane = -(-shape[-1] // 128) * 128
    return lead * sub * lane * itemsize


def _derive_vmem_limit(shapes):
    total = sum(_tile_padded_bytes(s) for s in shapes)
    need = 2 * total + (2 << 20)                  # double-buffer margin + headroom
    # Floor keeps compiler-internal scratch comfortable; cap stays well under
    # v7x's 64 MiB physical VMEM.
    return int(min(48 << 20, max(16 << 20, need)))


def conv_block_forward(x_ncl, t, params):
    """x_ncl: (B, C, L) float32 (PyTorch NCL), t: (B,).  Returns (B, C, L)."""
    B, C, L = x_ncl.shape
    D = params["time_w1"].shape[0]
    f32 = jnp.float32

    # Time input transposed to (1, B) so the in-kernel MLP keeps channels on sublanes.
    t2 = t.astype(f32).reshape(1, B)

    # Time MLP params.  Linear(D,D) and condition Linear(D,C) are folded on the host
    # (exact algebraic fusion, no nonlinearity between them).
    wt1 = params["time_w1"].astype(f32).reshape(D, 1)          # (D, 1)
    bt1 = params["time_b1"].astype(f32).reshape(D, 1)          # (D, 1)
    wf = params["cond_w"].astype(f32) @ params["time_w2"].astype(f32)             # (C, D)
    bf = (params["cond_w"].astype(f32) @ params["time_b2"].astype(f32)
          + params["cond_b"].astype(f32)).reshape(C, 1)                           # (C, 1)

    def conv_cols(w):
        # (C_out, C_in, 3) -> (C_in*3, C_out, 1): per-(ci,k) weight columns for the
        # channel-vectorized conv.  Conv biases intentionally not passed (cancelled
        # exactly by training-mode BN).
        return jnp.transpose(w.astype(f32), (1, 2, 0)).reshape(C * 3, C, 1)

    w1 = conv_cols(params["conv1_w"])
    w2 = conv_cols(params["conv2_w"])
    g1 = params["bn1_g"].astype(f32).reshape(C, 1)
    b1 = params["bn1_b"].astype(f32).reshape(C, 1)
    g2 = params["bn2_g"].astype(f32).reshape(C, 1)
    b2 = params["bn2_b"].astype(f32).reshape(C, 1)

    args = (x_ncl.astype(f32), t2, wt1, bt1, wf, bf, w1, g1, b1, w2, g2, b2)
    vmem = pl.BlockSpec(memory_space=pltpu.MemorySpace.VMEM)
    vlimit = _derive_vmem_limit([a.shape for a in args] + [(B, C, L)])

    return pl.pallas_call(
        functools.partial(_conv_block_kernel, B=B, C=C, L=L),
        out_shape=jax.ShapeDtypeStruct((B, C, L), f32),
        in_specs=[vmem] * len(args),
        out_specs=vmem,
        compiler_params=pltpu.CompilerParams(vmem_limit_bytes=vlimit),
    )(*args)


def _reference_forward(x, t, params):
    """Pure-JAX reference mirroring the PyTorch module in training mode."""
    f32 = jnp.float32
    B, C, L = x.shape
    t1 = t.astype(f32)[:, None]
    h = jax.nn.gelu(t1 @ params["time_w1"].T + params["time_b1"], approximate=False)
    t_emb = h @ params["time_w2"].T + params["time_b2"]
    scale = t_emb @ params["cond_w"].T + params["cond_b"]                  # (B, C)

    def conv(v, w, b):
        vp = jnp.pad(v, ((0, 0), (0, 0), (1, 1)))
        out = sum(jnp.einsum("oi,bil->bol", w[:, :, k], vp[:, :, k:k + L])
                  for k in range(3))
        return out + b[None, :, None]

    def bn(y, g, be):
        mu = y.mean(axis=(0, 2), keepdims=True)
        var = y.var(axis=(0, 2), keepdims=True)                # biased, training mode
        yn = (y - mu) / jnp.sqrt(var + _BN_EPS)
        return yn * g[None, :, None] + be[None, :, None]

    h1 = jax.nn.gelu(bn(conv(x.astype(f32), params["conv1_w"], params["conv1_b"]),
                        params["bn1_g"], params["bn1_b"]), approximate=False)
    h2 = jax.nn.gelu(bn(conv(h1, params["conv2_w"], params["conv2_b"]),
                        params["bn2_g"], params["bn2_b"]), approximate=False)
    return h2 * (scale + 1.0)[:, :, None]


def init_params(key, ch, time_emb_dim):
    """Deterministic synthetic init, PyTorch shape conventions."""
    D, C = time_emb_dim, ch
    ks = jax.random.split(key, 10)

    def uni(k, shape, fan_in):
        b = 1.0 / np.sqrt(fan_in)
        return jax.random.uniform(k, shape, jnp.float32, -b, b)

    return {
        "time_w1": uni(ks[0], (D, 1), 1),
        "time_b1": uni(ks[1], (D,), 1),
        "time_w2": uni(ks[2], (D, D), D),
        "time_b2": uni(ks[3], (D,), D),
        "cond_w": uni(ks[4], (C, D), D),
        "cond_b": uni(ks[5], (C,), D),
        "conv1_w": uni(ks[6], (C, C, 3), C * 3),
        # Conv biases kept for PyTorch parameter parity; the forward output does not
        # depend on them (training-mode BN mean subtraction cancels them exactly).
        "conv1_b": uni(ks[7], (C,), C * 3),
        "bn1_g": jnp.ones((C,), jnp.float32),
        "bn1_b": jnp.zeros((C,), jnp.float32),
        "conv2_w": uni(ks[8], (C, C, 3), C * 3),
        "conv2_b": uni(ks[9], (C,), C * 3),
        "bn2_g": jnp.ones((C,), jnp.float32),
        "bn2_b": jnp.zeros((C,), jnp.float32),
    }


if __name__ == "__main__":
    B, C, L, D = 2, 4, 16, 32          # batch, channels, length, time_emb_dim
    key = jax.random.PRNGKey(0)
    kx, kt, kp = jax.random.split(key, 3)

    x = jax.random.normal(kx, (B, C, L), jnp.float32)      # NCL, like nn.Conv1d input
    t = jax.random.uniform(kt, (B,), jnp.float32)          # per-sample timestep
    params = init_params(kp, C, D)

    out = jax.block_until_ready(conv_block_forward(x, t, params))
    ref = jax.block_until_ready(_reference_forward(x, t, params))

    assert out.shape == (B, C, L) and out.dtype == jnp.float32
    assert bool(jnp.all(jnp.isfinite(out)))
    np.testing.assert_allclose(np.asarray(out), np.asarray(ref), rtol=1e-3, atol=1e-4)
    print("KERNEL_OK")
</pallas_src>

<mosaic_0001>
module attributes {stable_mosaic.version = 11 : i64} {
  func.func @_conv_block_kernel(%arg0: memref<2x4x16xf32, #tpu.memory_space<vmem>>, %arg1: memref<1x2xf32, #tpu.memory_space<vmem>>, %arg2: memref<32x1xf32, #tpu.memory_space<vmem>>, %arg3: memref<32x1xf32, #tpu.memory_space<vmem>>, %arg4: memref<4x32xf32, #tpu.memory_space<vmem>>, %arg5: memref<4x1xf32, #tpu.memory_space<vmem>>, %arg6: memref<12x4x1xf32, #tpu.memory_space<vmem>>, %arg7: memref<4x1xf32, #tpu.memory_space<vmem>>, %arg8: memref<4x1xf32, #tpu.memory_space<vmem>>, %arg9: memref<12x4x1xf32, #tpu.memory_space<vmem>>, %arg10: memref<4x1xf32, #tpu.memory_space<vmem>>, %arg11: memref<4x1xf32, #tpu.memory_space<vmem>>, %arg12: memref<2x4x16xf32, #tpu.memory_space<vmem>>) attributes {dimension_semantics = [], scalar_prefetch = 0 : i64, scratch_operands = 0 : i64, tpu.core_type = #tpu.core_type<tc>} {
    %c0 = arith.constant 0 : index
    %c0_0 = arith.constant 0 : index
    %0 = vector.load %arg1[%c0, %c0_0] : memref<1x2xf32, #tpu.memory_space<vmem>>, vector<1x2xf32>
    %c0_1 = arith.constant 0 : index
    %c0_2 = arith.constant 0 : index
    %1 = vector.load %arg2[%c0_1, %c0_2] : memref<32x1xf32, #tpu.memory_space<vmem>>, vector<32x1xf32>
    %2 = vector.broadcast %1 : vector<32x1xf32> to vector<32x2xf32>
    %3 = vector.broadcast %0 : vector<1x2xf32> to vector<32x2xf32>
    %4 = arith.mulf %2, %3 : vector<32x2xf32>
    %c0_3 = arith.constant 0 : index
    %c0_4 = arith.constant 0 : index
    %5 = vector.load %arg3[%c0_3, %c0_4] : memref<32x1xf32, #tpu.memory_space<vmem>>, vector<32x1xf32>
    %6 = vector.broadcast %5 : vector<32x1xf32> to vector<32x2xf32>
    %7 = arith.addf %4, %6 : vector<32x2xf32>
    %8 = math.absf %7 : vector<32x2xf32>
    %cst = arith.constant 0.231641889 : f32
    %9 = vector.broadcast %cst : f32 to vector<32x2xf32>
    %10 = arith.mulf %9, %8 : vector<32x2xf32>
    %cst_5 = arith.constant 1.000000e+00 : f32
    %11 = vector.broadcast %cst_5 : f32 to vector<32x2xf32>
    %12 = arith.addf %11, %10 : vector<32x2xf32>
    %13 = tpu.reciprocal %12 {approx = true} : vector<32x2xf32> -> vector<32x2xf32>
    %14 = arith.mulf %12, %13 : vector<32x2xf32>
    %cst_6 = arith.constant 2.000000e+00 : f32
    %15 = vector.broadcast %cst_6 : f32 to vector<32x2xf32>
    %16 = arith.subf %15, %14 : vector<32x2xf32>
    %17 = arith.mulf %13, %16 : vector<32x2xf32>
    %cst_7 = arith.constant 1.06140542 : f32
    %18 = vector.broadcast %cst_7 : f32 to vector<32x2xf32>
    %19 = arith.mulf %18, %17 : vector<32x2xf32>
    %cst_8 = arith.constant -1.45315206 : f32
    %20 = vector.broadcast %cst_8 : f32 to vector<32x2xf32>
    %21 = arith.addf %19, %20 : vector<32x2xf32>
    %22 = arith.mulf %21, %17 : vector<32x2xf32>
    %cst_9 = arith.constant 1.42141378 : f32
    %23 = vector.broadcast %cst_9 : f32 to vector<32x2xf32>
    %24 = arith.addf %22, %23 : vector<32x2xf32>
    %25 = arith.mulf %24, %17 : vector<32x2xf32>
    %cst_10 = arith.constant -0.284496725 : f32
    %26 = vector.broadcast %cst_10 : f32 to vector<32x2xf32>
    %27 = arith.addf %25, %26 : vector<32x2xf32>
    %28 = arith.mulf %27, %17 : vector<32x2xf32>
    %cst_11 = arith.constant 0.254829586 : f32
    %29 = vector.broadcast %cst_11 : f32 to vector<32x2xf32>
    %30 = arith.addf %28, %29 : vector<32x2xf32>
    %31 = arith.mulf %30, %17 : vector<32x2xf32>
    %cst_12 = arith.constant -5.000000e-01 : f32
    %32 = vector.broadcast %cst_12 : f32 to vector<32x2xf32>
    %33 = arith.mulf %32, %7 : vector<32x2xf32>
    %34 = arith.mulf %33, %7 : vector<32x2xf32>
    %35 = math.exp %34 : vector<32x2xf32>
    %36 = arith.mulf %31, %35 : vector<32x2xf32>
    %cst_13 = arith.constant 1.000000e+00 : f32
    %37 = vector.broadcast %cst_13 : f32 to vector<32x2xf32>
    %38 = arith.subf %37, %36 : vector<32x2xf32>
    %cst_14 = arith.constant 0.000000e+00 : f32
    %39 = vector.broadcast %cst_14 : f32 to vector<32x2xf32>
    %40 = arith.cmpf olt, %7, %39 : vector<32x2xf32>
    %cst_15 = arith.constant 0.000000e+00 : f32
    %41 = vector.broadcast %cst_15 : f32 to vector<32x2xf32>
    %42 = arith.subf %41, %38 : vector<32x2xf32>
    %43 = arith.select %40, %42, %38 : vector<32x2xi1>, vector<32x2xf32>
    %cst_16 = arith.constant 5.000000e-01 : f32
    %44 = vector.broadcast %cst_16 : f32 to vector<32x2xf32>
    %45 = arith.mulf %44, %7 : vector<32x2xf32>
    %cst_17 = arith.constant 1.000000e+00 : f32
    %46 = vector.broadcast %cst_17 : f32 to vector<32x2xf32>
    %47 = arith.addf %46, %43 : vector<32x2xf32>
    %48 = arith.mulf %45, %47 : vector<32x2xf32>
    %c0_18 = arith.constant 0 : index
    %c0_19 = arith.constant 0 : index
    %49 = vector.load %arg4[%c0_18, %c0_19] : memref<4x32xf32, #tpu.memory_space<vmem>>, vector<4x32xf32>
    %cst_20 = arith.constant dense<0.000000e+00> : vector<4x2xf32>
    %50 = tpu.matmul %49, %48, %cst_20 {dimension_numbers = #tpu.dot_dimension_numbers<[1], [0], [0], [1], [0, 0, 1, 1], [], []>} : vector<4x32xf32>, vector<32x2xf32>, vector<4x2xf32> -> vector<4x2xf32>
    %c0_21 = arith.constant 0 : index
    %c0_22 = arith.constant 0 : index
    %51 = vector.load %arg5[%c0_21, %c0_22] : memref<4x1xf32, #tpu.memory_space<vmem>>, vector<4x1xf32>
    %52 = vector.broadcast %51 : vector<4x1xf32> to vector<4x2xf32>
    %53 = arith.addf %50, %52 : vector<4x2xf32>
    %cst_23 = arith.constant 1.000000e+00 : f32
    %54 = vector.broadcast %cst_23 : f32 to vector<4x2xf32>
    %55 = arith.addf %53, %54 : vector<4x2xf32>
    %c0_24 = arith.constant 0 : index
    %c0_25 = arith.constant 0 : index
    %c0_26 = arith.constant 0 : index
    %56 = vector.load %arg0[%c0_24, %c0_25, %c0_26] : memref<2x4x16xf32, #tpu.memory_space<vmem>>, vector<2x4x16xf32>
    %cst_27 = arith.constant 0.000000e+00 : f32
    %57 = vector.broadcast %cst_27 : f32 to vector<2x4x1xf32>
    %58 = vector.extract_strided_slice %56 {offsets = [0, 0, 0], sizes = [2, 4, 15], strides = [1, 1, 1]} : vector<2x4x16xf32> to vector<2x4x15xf32>
    %59 = tpu.concatenate %57, %58 in 2 : vector<2x4x1xf32>, vector<2x4x15xf32> -> vector<2x4x16xf32>
    %60 = vector.extract_strided_slice %56 {offsets = [0, 0, 1], sizes = [2, 4, 15], strides = [1, 1, 1]} : vector<2x4x16xf32> to vector<2x4x15xf32>
    %61 = tpu.concatenate %60, %57 in 2 : vector<2x4x15xf32>, vector<2x4x1xf32> -> vector<2x4x16xf32>
    %c0_28 = arith.constant 0 : index
    %c0_29 = arith.constant 0 : index
    %c0_30 = arith.constant 0 : index
    %62 = vector.load %arg6[%c0_28, %c0_29, %c0_30] : memref<12x4x1xf32, #tpu.memory_space<vmem>>, vector<1x4x1xf32>
    %63 = vector.shape_cast %62 : vector<1x4x1xf32> to vector<4x1xf32>
    %64 = vector.extract_strided_slice %59 {offsets = [0, 0, 0], sizes = [2, 1, 16], strides = [1, 1, 1]} : vector<2x4x16xf32> to vector<2x1x16xf32>
    %65 = vector.shape_cast %63 : vector<4x1xf32> to vector<1x4x1xf32>
    %66 = vector.broadcast %65 : vector<1x4x1xf32> to vector<2x4x16xf32>
    %67 = vector.broadcast %64 : vector<2x1x16xf32> to vector<2x4x16xf32>
    %68 = arith.mulf %66, %67 : vector<2x4x16xf32>
    %c1 = arith.constant 1 : index
    %c0_31 = arith.constant 0 : index
    %c0_32 = arith.constant 0 : index
    %69 = vector.load %arg6[%c1, %c0_31, %c0_32] : memref<12x4x1xf32, #tpu.memory_space<vmem>>, vector<1x4x1xf32>
    %70 = vector.shape_cast %69 : vector<1x4x1xf32> to vector<4x1xf32>
    %71 = vector.extract_strided_slice %56 {offsets = [0, 0, 0], sizes = [2, 1, 16], strides = [1, 1, 1]} : vector<2x4x16xf32> to vector<2x1x16xf32>
    %72 = vector.shape_cast %70 : vector<4x1xf32> to vector<1x4x1xf32>
    %73 = vector.broadcast %72 : vector<1x4x1xf32> to vector<2x4x16xf32>
    %74 = vector.broadcast %71 : vector<2x1x16xf32> to vector<2x4x16xf32>
    %75 = arith.mulf %73, %74 : vector<2x4x16xf32>
    %76 = arith.addf %68, %75 : vector<2x4x16xf32>
    %c2 = arith.constant 2 : index
    %c0_33 = arith.constant 0 : index
    %c0_34 = arith.constant 0 : index
    %77 = vector.load %arg6[%c2, %c0_33, %c0_34] : memref<12x4x1xf32, #tpu.memory_space<vmem>>, vector<1x4x1xf32>
    %78 = vector.shape_cast %77 : vector<1x4x1xf32> to vector<4x1xf32>
    %79 = vector.extract_strided_slice %61 {offsets = [0, 0, 0], sizes = [2, 1, 16], strides = [1, 1, 1]} : vector<2x4x16xf32> to vector<2x1x16xf32>
    %80 = vector.shape_cast %78 : vector<4x1xf32> to vector<1x4x1xf32>
    %81 = vector.broadcast %80 : vector<1x4x1xf32> to vector<2x4x16xf32>
    %82 = vector.broadcast %79 : vector<2x1x16xf32> to vector<2x4x16xf32>
    %83 = arith.mulf %81, %82 : vector<2x4x16xf32>
    %84 = arith.addf %76, %83 : vector<2x4x16xf32>
    %c3 = arith.constant 3 : index
    %c0_35 = arith.constant 0 : index
    %c0_36 = arith.constant 0 : index
    %85 = vector.load %arg6[%c3, %c0_35, %c0_36] : memref<12x4x1xf32, #tpu.memory_space<vmem>>, vector<1x4x1xf32>
    %86 = vector.shape_cast %85 : vector<1x4x1xf32> to vector<4x1xf32>
    %87 = vector.extract_strided_slice %59 {offsets = [0, 1, 0], sizes = [2, 1, 16], strides = [1, 1, 1]} : vector<2x4x16xf32> to vector<2x1x16xf32>
    %88 = vector.shape_cast %86 : vector<4x1xf32> to vector<1x4x1xf32>
    %89 = vector.broadcast %88 : vector<1x4x1xf32> to vector<2x4x16xf32>
    %90 = vector.broadcast %87 : vector<2x1x16xf32> to vector<2x4x16xf32>
    %91 = arith.mulf %89, %90 : vector<2x4x16xf32>
    %92 = arith.addf %84, %91 : vector<2x4x16xf32>
    %c4 = arith.constant 4 : index
    %c0_37 = arith.constant 0 : index
    %c0_38 = arith.constant 0 : index
    %93 = vector.load %arg6[%c4, %c0_37, %c0_38] : memref<12x4x1xf32, #tpu.memory_space<vmem>>, vector<1x4x1xf32>
    %94 = vector.shape_cast %93 : vector<1x4x1xf32> to vector<4x1xf32>
    %95 = vector.extract_strided_slice %56 {offsets = [0, 1, 0], sizes = [2, 1, 16], strides = [1, 1, 1]} : vector<2x4x16xf32> to vector<2x1x16xf32>
    %96 = vector.shape_cast %94 : vector<4x1xf32> to vector<1x4x1xf32>
    %97 = vector.broadcast %96 : vector<1x4x1xf32> to vector<2x4x16xf32>
    %98 = vector.broadcast %95 : vector<2x1x16xf32> to vector<2x4x16xf32>
    %99 = arith.mulf %97, %98 : vector<2x4x16xf32>
    %100 = arith.addf %92, %99 : vector<2x4x16xf32>
    %c5 = arith.constant 5 : index
    %c0_39 = arith.constant 0 : index
    %c0_40 = arith.constant 0 : index
    %101 = vector.load %arg6[%c5, %c0_39, %c0_40] : memref<12x4x1xf32, #tpu.memory_space<vmem>>, vector<1x4x1xf32>
    %102 = vector.shape_cast %101 : vector<1x4x1xf32> to vector<4x1xf32>
    %103 = vector.extract_strided_slice %61 {offsets = [0, 1, 0], sizes = [2, 1, 16], strides = [1, 1, 1]} : vector<2x4x16xf32> to vector<2x1x16xf32>
    %104 = vector.shape_cast %102 : vector<4x1xf32> to vector<1x4x1xf32>
    %105 = vector.broadcast %104 : vector<1x4x1xf32> to vector<2x4x16xf32>
    %106 = vector.broadcast %103 : vector<2x1x16xf32> to vector<2x4x16xf32>
    %107 = arith.mulf %105, %106 : vector<2x4x16xf32>
    %108 = arith.addf %100, %107 : vector<2x4x16xf32>
    %c6 = arith.constant 6 : index
    %c0_41 = arith.constant 0 : index
    %c0_42 = arith.constant 0 : index
    %109 = vector.load %arg6[%c6, %c0_41, %c0_42] : memref<12x4x1xf32, #tpu.memory_space<vmem>>, vector<1x4x1xf32>
    %110 = vector.shape_cast %109 : vector<1x4x1xf32> to vector<4x1xf32>
    %111 = vector.extract_strided_slice %59 {offsets = [0, 2, 0], sizes = [2, 1, 16], strides = [1, 1, 1]} : vector<2x4x16xf32> to vector<2x1x16xf32>
    %112 = vector.shape_cast %110 : vector<4x1xf32> to vector<1x4x1xf32>
    %113 = vector.broadcast %112 : vector<1x4x1xf32> to vector<2x4x16xf32>
    %114 = vector.broadcast %111 : vector<2x1x16xf32> to vector<2x4x16xf32>
    %115 = arith.mulf %113, %114 : vector<2x4x16xf32>
    %116 = arith.addf %108, %115 : vector<2x4x16xf32>
    %c7 = arith.constant 7 : index
    %c0_43 = arith.constant 0 : index
    %c0_44 = arith.constant 0 : index
    %117 = vector.load %arg6[%c7, %c0_43, %c0_44] : memref<12x4x1xf32, #tpu.memory_space<vmem>>, vector<1x4x1xf32>
    %118 = vector.shape_cast %117 : vector<1x4x1xf32> to vector<4x1xf32>
    %119 = vector.extract_strided_slice %56 {offsets = [0, 2, 0], sizes = [2, 1, 16], strides = [1, 1, 1]} : vector<2x4x16xf32> to vector<2x1x16xf32>
    %120 = vector.shape_cast %118 : vector<4x1xf32> to vector<1x4x1xf32>
    %121 = vector.broadcast %120 : vector<1x4x1xf32> to vector<2x4x16xf32>
    %122 = vector.broadcast %119 : vector<2x1x16xf32> to vector<2x4x16xf32>
    %123 = arith.mulf %121, %122 : vector<2x4x16xf32>
    %124 = arith.addf %116, %123 : vector<2x4x16xf32>
    %c8 = arith.constant 8 : index
    %c0_45 = arith.constant 0 : index
    %c0_46 = arith.constant 0 : index
    %125 = vector.load %arg6[%c8, %c0_45, %c0_46] : memref<12x4x1xf32, #tpu.memory_space<vmem>>, vector<1x4x1xf32>
    %126 = vector.shape_cast %125 : vector<1x4x1xf32> to vector<4x1xf32>
    %127 = vector.extract_strided_slice %61 {offsets = [0, 2, 0], sizes = [2, 1, 16], strides = [1, 1, 1]} : vector<2x4x16xf32> to vector<2x1x16xf32>
    %128 = vector.shape_cast %126 : vector<4x1xf32> to vector<1x4x1xf32>
    %129 = vector.broadcast %128 : vector<1x4x1xf32> to vector<2x4x16xf32>
    %130 = vector.broadcast %127 : vector<2x1x16xf32> to vector<2x4x16xf32>
    %131 = arith.mulf %129, %130 : vector<2x4x16xf32>
    %132 = arith.addf %124, %131 : vector<2x4x16xf32>
    %c9 = arith.constant 9 : index
    %c0_47 = arith.constant 0 : index
    %c0_48 = arith.constant 0 : index
    %133 = vector.load %arg6[%c9, %c0_47, %c0_48] : memref<12x4x1xf32, #tpu.memory_space<vmem>>, vector<1x4x1xf32>
    %134 = vector.shape_cast %133 : vector<1x4x1xf32> to vector<4x1xf32>
    %135 = vector.extract_strided_slice %59 {offsets = [0, 3, 0], sizes = [2, 1, 16], strides = [1, 1, 1]} : vector<2x4x16xf32> to vector<2x1x16xf32>
    %136 = vector.shape_cast %134 : vector<4x1xf32> to vector<1x4x1xf32>
    %137 = vector.broadcast %136 : vector<1x4x1xf32> to vector<2x4x16xf32>
    %138 = vector.broadcast %135 : vector<2x1x16xf32> to vector<2x4x16xf32>
    %139 = arith.mulf %137, %138 : vector<2x4x16xf32>
    %140 = arith.addf %132, %139 : vector<2x4x16xf32>
    %c10 = arith.constant 10 : index
    %c0_49 = arith.constant 0 : index
    %c0_50 = arith.constant 0 : index
    %141 = vector.load %arg6[%c10, %c0_49, %c0_50] : memref<12x4x1xf32, #tpu.memory_space<vmem>>, vector<1x4x1xf32>
    %142 = vector.shape_cast %141 : vector<1x4x1xf32> to vector<4x1xf32>
    %143 = vector.extract_strided_slice %56 {offsets = [0, 3, 0], sizes = [2, 1, 16], strides = [1, 1, 1]} : vector<2x4x16xf32> to vector<2x1x16xf32>
    %144 = vector.shape_cast %142 : vector<4x1xf32> to vector<1x4x1xf32>
    %145 = vector.broadcast %144 : vector<1x4x1xf32> to vector<2x4x16xf32>
    %146 = vector.broadcast %143 : vector<2x1x16xf32> to vector<2x4x16xf32>
    %147 = arith.mulf %145, %146 : vector<2x4x16xf32>
    %148 = arith.addf %140, %147 : vector<2x4x16xf32>
    %c11 = arith.constant 11 : index
    %c0_51 = arith.constant 0 : index
    %c0_52 = arith.constant 0 : index
    %149 = vector.load %arg6[%c11, %c0_51, %c0_52] : memref<12x4x1xf32, #tpu.memory_space<vmem>>, vector<1x4x1xf32>
    %150 = vector.shape_cast %149 : vector<1x4x1xf32> to vector<4x1xf32>
    %151 = vector.extract_strided_slice %61 {offsets = [0, 3, 0], sizes = [2, 1, 16], strides = [1, 1, 1]} : vector<2x4x16xf32> to vector<2x1x16xf32>
    %152 = vector.shape_cast %150 : vector<4x1xf32> to vector<1x4x1xf32>
    %153 = vector.broadcast %152 : vector<1x4x1xf32> to vector<2x4x16xf32>
    %154 = vector.broadcast %151 : vector<2x1x16xf32> to vector<2x4x16xf32>
    %155 = arith.mulf %153, %154 : vector<2x4x16xf32>
    %156 = arith.addf %148, %155 : vector<2x4x16xf32>
    %cst_53 = arith.constant dense<0.000000e+00> : vector<2x4xf32>
    %157 = vector.multi_reduction <add>, %156, %cst_53 [2] : vector<2x4x16xf32> to vector<2x4xf32>
    %158 = vector.shape_cast %157 : vector<2x4xf32> to vector<2x4x1xf32>
    %159 = arith.mulf %156, %156 : vector<2x4x16xf32>
    %cst_54 = arith.constant dense<0.000000e+00> : vector<2x4xf32>
    %160 = vector.multi_reduction <add>, %159, %cst_54 [2] : vector<2x4x16xf32> to vector<2x4xf32>
    %161 = vector.shape_cast %160 : vector<2x4xf32> to vector<2x4x1xf32>
    %cst_55 = arith.constant dense<0.000000e+00> : vector<4x1xf32>
    %162 = vector.multi_reduction <add>, %158, %cst_55 [0] : vector<2x4x1xf32> to vector<4x1xf32>
    %163 = vector.shape_cast %162 : vector<4x1xf32> to vector<1x4x1xf32>
    %cst_56 = arith.constant dense<0.000000e+00> : vector<4x1xf32>
    %164 = vector.multi_reduction <add>, %161, %cst_56 [0] : vector<2x4x1xf32> to vector<4x1xf32>
    %165 = vector.shape_cast %164 : vector<4x1xf32> to vector<1x4x1xf32>
    %cst_57 = arith.constant 3.125000e-02 : f32
    %166 = vector.broadcast %cst_57 : f32 to vector<1x4x1xf32>
    %167 = arith.mulf %163, %166 : vector<1x4x1xf32>
    %cst_58 = arith.constant 3.125000e-02 : f32
    %168 = vector.broadcast %cst_58 : f32 to vector<1x4x1xf32>
    %169 = arith.mulf %165, %168 : vector<1x4x1xf32>
    %170 = arith.mulf %167, %167 : vector<1x4x1xf32>
    %171 = arith.subf %169, %170 : vector<1x4x1xf32>
    %cst_59 = arith.constant 0.000000e+00 : f32
    %172 = vector.broadcast %cst_59 : f32 to vector<1x4x1xf32>
    %173 = arith.maximumf %171, %172 : vector<1x4x1xf32>
    %174 = vector.broadcast %167 : vector<1x4x1xf32> to vector<2x4x16xf32>
    %175 = arith.subf %156, %174 : vector<2x4x16xf32>
    %cst_60 = arith.constant 9.99999974E-6 : f32
    %176 = vector.broadcast %cst_60 : f32 to vector<1x4x1xf32>
    %177 = arith.addf %173, %176 : vector<1x4x1xf32>
    %178 = math.rsqrt %177 : vector<1x4x1xf32>
    %c0_61 = arith.constant 0 : index
    %c0_62 = arith.constant 0 : index
    %179 = vector.load %arg7[%c0_61, %c0_62] : memref<4x1xf32, #tpu.memory_space<vmem>>, vector<4x1xf32>
    %180 = vector.shape_cast %179 : vector<4x1xf32> to vector<1x4x1xf32>
    %181 = arith.mulf %178, %180 : vector<1x4x1xf32>
    %182 = vector.broadcast %181 : vector<1x4x1xf32> to vector<2x4x16xf32>
    %183 = arith.mulf %175, %182 : vector<2x4x16xf32>
    %c0_63 = arith.constant 0 : index
    %c0_64 = arith.constant 0 : index
    %184 = vector.load %arg8[%c0_63, %c0_64] : memref<4x1xf32, #tpu.memory_space<vmem>>, vector<4x1xf32>
    %185 = vector.shape_cast %184 : vector<4x1xf32> to vector<1x4x1xf32>
    %186 = vector.broadcast %185 : vector<1x4x1xf32> to vector<2x4x16xf32>
    %187 = arith.addf %183, %186 : vector<2x4x16xf32>
    %188 = math.absf %187 : vector<2x4x16xf32>
    %cst_65 = arith.constant 0.231641889 : f32
    %189 = vector.broadcast %cst_65 : f32 to vector<2x4x16xf32>
    %190 = arith.mulf %189, %188 : vector<2x4x16xf32>
    %cst_66 = arith.constant 1.000000e+00 : f32
    %191 = vector.broadcast %cst_66 : f32 to vector<2x4x16xf32>
    %192 = arith.addf %191, %190 : vector<2x4x16xf32>
    %193 = tpu.reciprocal %192 {approx = true} : vector<2x4x16xf32> -> vector<2x4x16xf32>
    %194 = arith.mulf %192, %193 : vector<2x4x16xf32>
    %cst_67 = arith.constant 2.000000e+00 : f32
    %195 = vector.broadcast %cst_67 : f32 to vector<2x4x16xf32>
    %196 = arith.subf %195, %194 : vector<2x4x16xf32>
    %197 = arith.mulf %193, %196 : vector<2x4x16xf32>
    %cst_68 = arith.constant 1.06140542 : f32
    %198 = vector.broadcast %cst_68 : f32 to vector<2x4x16xf32>
    %199 = arith.mulf %198, %197 : vector<2x4x16xf32>
    %cst_69 = arith.constant -1.45315206 : f32
    %200 = vector.broadcast %cst_69 : f32 to vector<2x4x16xf32>
    %201 = arith.addf %199, %200 : vector<2x4x16xf32>
    %202 = arith.mulf %201, %197 : vector<2x4x16xf32>
    %cst_70 = arith.constant 1.42141378 : f32
    %203 = vector.broadcast %cst_70 : f32 to vector<2x4x16xf32>
    %204 = arith.addf %202, %203 : vector<2x4x16xf32>
    %205 = arith.mulf %204, %197 : vector<2x4x16xf32>
    %cst_71 = arith.constant -0.284496725 : f32
    %206 = vector.broadcast %cst_71 : f32 to vector<2x4x16xf32>
    %207 = arith.addf %205, %206 : vector<2x4x16xf32>
    %208 = arith.mulf %207, %197 : vector<2x4x16xf32>
    %cst_72 = arith.constant 0.254829586 : f32
    %209 = vector.broadcast %cst_72 : f32 to vector<2x4x16xf32>
    %210 = arith.addf %208, %209 : vector<2x4x16xf32>
    %211 = arith.mulf %210, %197 : vector<2x4x16xf32>
    %cst_73 = arith.constant -5.000000e-01 : f32
    %212 = vector.broadcast %cst_73 : f32 to vector<2x4x16xf32>
    %213 = arith.mulf %212, %187 : vector<2x4x16xf32>
    %214 = arith.mulf %213, %187 : vector<2x4x16xf32>
    %215 = math.exp %214 : vector<2x4x16xf32>
    %216 = arith.mulf %211, %215 : vector<2x4x16xf32>
    %cst_74 = arith.constant 1.000000e+00 : f32
    %217 = vector.broadcast %cst_74 : f32 to vector<2x4x16xf32>
    %218 = arith.subf %217, %216 : vector<2x4x16xf32>
    %cst_75 = arith.constant 0.000000e+00 : f32
    %219 = vector.broadcast %cst_75 : f32 to vector<2x4x16xf32>
    %220 = arith.cmpf olt, %187, %219 : vector<2x4x16xf32>
    %cst_76 = arith.constant 0.000000e+00 : f32
    %221 = vector.broadcast %cst_76 : f32 to vector<2x4x16xf32>
    %222 = arith.subf %221, %218 : vector<2x4x16xf32>
    %223 = arith.select %220, %222, %218 : vector<2x4x16xi1>, vector<2x4x16xf32>
    %cst_77 = arith.constant 5.000000e-01 : f32
    %224 = vector.broadcast %cst_77 : f32 to vector<2x4x16xf32>
    %225 = arith.mulf %224, %187 : vector<2x4x16xf32>
    %cst_78 = arith.constant 1.000000e+00 : f32
    %226 = vector.broadcast %cst_78 : f32 to vector<2x4x16xf32>
    %227 = arith.addf %226, %223 : vector<2x4x16xf32>
    %228 = arith.mulf %225, %227 : vector<2x4x16xf32>
    %229 = vector.extract_strided_slice %228 {offsets = [0, 0, 0], sizes = [2, 4, 15], strides = [1, 1, 1]} : vector<2x4x16xf32> to vector<2x4x15xf32>
    %230 = tpu.concatenate %57, %229 in 2 : vector<2x4x1xf32>, vector<2x4x15xf32> -> vector<2x4x16xf32>
    %231 = vector.extract_strided_slice %228 {offsets = [0, 0, 1], sizes = [2, 4, 15], strides = [1, 1, 1]} : vector<2x4x16xf32> to vector<2x4x15xf32>
    %232 = tpu.concatenate %231, %57 in 2 : vector<2x4x15xf32>, vector<2x4x1xf32> -> vector<2x4x16xf32>
    %c0_79 = arith.constant 0 : index
    %c0_80 = arith.constant 0 : index
    %c0_81 = arith.constant 0 : index
    %233 = vector.load %arg9[%c0_79, %c0_80, %c0_81] : memref<12x4x1xf32, #tpu.memory_space<vmem>>, vector<1x4x1xf32>
    %234 = vector.shape_cast %233 : vector<1x4x1xf32> to vector<4x1xf32>
    %235 = vector.extract_strided_slice %230 {offsets = [0, 0, 0], sizes = [2, 1, 16], strides = [1, 1, 1]} : vector<2x4x16xf32> to vector<2x1x16xf32>
    %236 = vector.shape_cast %234 : vector<4x1xf32> to vector<1x4x1xf32>
    %237 = vector.broadcast %236 : vector<1x4x1xf32> to vector<2x4x16xf32>
    %238 = vector.broadcast %235 : vector<2x1x16xf32> to vector<2x4x16xf32>
    %239 = arith.mulf %237, %238 : vector<2x4x16xf32>
    %c1_82 = arith.constant 1 : index
    %c0_83 = arith.constant 0 : index
    %c0_84 = arith.constant 0 : index
    %240 = vector.load %arg9[%c1_82, %c0_83, %c0_84] : memref<12x4x1xf32, #tpu.memory_space<vmem>>, vector<1x4x1xf32>
    %241 = vector.shape_cast %240 : vector<1x4x1xf32> to vector<4x1xf32>
    %242 = vector.extract_strided_slice %228 {offsets = [0, 0, 0], sizes = [2, 1, 16], strides = [1, 1, 1]} : vector<2x4x16xf32> to vector<2x1x16xf32>
    %243 = vector.shape_cast %241 : vector<4x1xf32> to vector<1x4x1xf32>
    %244 = vector.broadcast %243 : vector<1x4x1xf32> to vector<2x4x16xf32>
    %245 = vector.broadcast %242 : vector<2x1x16xf32> to vector<2x4x16xf32>
    %246 = arith.mulf %244, %245 : vector<2x4x16xf32>
    %247 = arith.addf %239, %246 : vector<2x4x16xf32>
    %c2_85 = arith.constant 2 : index
    %c0_86 = arith.constant 0 : index
    %c0_87 = arith.constant 0 : index
    %248 = vector.load %arg9[%c2_85, %c0_86, %c0_87] : memref<12x4x1xf32, #tpu.memory_space<vmem>>, vector<1x4x1xf32>
    %249 = vector.shape_cast %248 : vector<1x4x1xf32> to vector<4x1xf32>
    %250 = vector.extract_strided_slice %232 {offsets = [0, 0, 0], sizes = [2, 1, 16], strides = [1, 1, 1]} : vector<2x4x16xf32> to vector<2x1x16xf32>
    %251 = vector.shape_cast %249 : vector<4x1xf32> to vector<1x4x1xf32>
    %252 = vector.broadcast %251 : vector<1x4x1xf32> to vector<2x4x16xf32>
    %253 = vector.broadcast %250 : vector<2x1x16xf32> to vector<2x4x16xf32>
    %254 = arith.mulf %252, %253 : vector<2x4x16xf32>
    %255 = arith.addf %247, %254 : vector<2x4x16xf32>
    %c3_88 = arith.constant 3 : index
    %c0_89 = arith.constant 0 : index
    %c0_90 = arith.constant 0 : index
    %256 = vector.load %arg9[%c3_88, %c0_89, %c0_90] : memref<12x4x1xf32, #tpu.memory_space<vmem>>, vector<1x4x1xf32>
    %257 = vector.shape_cast %256 : vector<1x4x1xf32> to vector<4x1xf32>
    %258 = vector.extract_strided_slice %230 {offsets = [0, 1, 0], sizes = [2, 1, 16], strides = [1, 1, 1]} : vector<2x4x16xf32> to vector<2x1x16xf32>
    %259 = vector.shape_cast %257 : vector<4x1xf32> to vector<1x4x1xf32>
    %260 = vector.broadcast %259 : vector<1x4x1xf32> to vector<2x4x16xf32>
    %261 = vector.broadcast %258 : vector<2x1x16xf32> to vector<2x4x16xf32>
    %262 = arith.mulf %260, %261 : vector<2x4x16xf32>
    %263 = arith.addf %255, %262 : vector<2x4x16xf32>
    %c4_91 = arith.constant 4 : index
    %c0_92 = arith.constant 0 : index
    %c0_93 = arith.constant 0 : index
    %264 = vector.load %arg9[%c4_91, %c0_92, %c0_93] : memref<12x4x1xf32, #tpu.memory_space<vmem>>, vector<1x4x1xf32>
    %265 = vector.shape_cast %264 : vector<1x4x1xf32> to vector<4x1xf32>
    %266 = vector.extract_strided_slice %228 {offsets = [0, 1, 0], sizes = [2, 1, 16], strides = [1, 1, 1]} : vector<2x4x16xf32> to vector<2x1x16xf32>
    %267 = vector.shape_cast %265 : vector<4x1xf32> to vector<1x4x1xf32>
    %268 = vector.broadcast %267 : vector<1x4x1xf32> to vector<2x4x16xf32>
    %269 = vector.broadcast %266 : vector<2x1x16xf32> to vector<2x4x16xf32>
    %270 = arith.mulf %268, %269 : vector<2x4x16xf32>
    %271 = arith.addf %263, %270 : vector<2x4x16xf32>
    %c5_94 = arith.constant 5 : index
    %c0_95 = arith.constant 0 : index
    %c0_96 = arith.constant 0 : index
    %272 = vector.load %arg9[%c5_94, %c0_95, %c0_96] : memref<12x4x1xf32, #tpu.memory_space<vmem>>, vector<1x4x1xf32>
    %273 = vector.shape_cast %272 : vector<1x4x1xf32> to vector<4x1xf32>
    %274 = vector.extract_strided_slice %232 {offsets = [0, 1, 0], sizes = [2, 1, 16], strides = [1, 1, 1]} : vector<2x4x16xf32> to vector<2x1x16xf32>
    %275 = vector.shape_cast %273 : vector<4x1xf32> to vector<1x4x1xf32>
    %276 = vector.broadcast %275 : vector<1x4x1xf32> to vector<2x4x16xf32>
    %277 = vector.broadcast %274 : vector<2x1x16xf32> to vector<2x4x16xf32>
    %278 = arith.mulf %276, %277 : vector<2x4x16xf32>
    %279 = arith.addf %271, %278 : vector<2x4x16xf32>
    %c6_97 = arith.constant 6 : index
    %c0_98 = arith.constant 0 : index
    %c0_99 = arith.constant 0 : index
    %280 = vector.load %arg9[%c6_97, %c0_98, %c0_99] : memref<12x4x1xf32, #tpu.memory_space<vmem>>, vector<1x4x1xf32>
    %281 = vector.shape_cast %280 : vector<1x4x1xf32> to vector<4x1xf32>
    %282 = vector.extract_strided_slice %230 {offsets = [0, 2, 0], sizes = [2, 1, 16], strides = [1, 1, 1]} : vector<2x4x16xf32> to vector<2x1x16xf32>
    %283 = vector.shape_cast %281 : vector<4x1xf32> to vector<1x4x1xf32>
    %284 = vector.broadcast %283 : vector<1x4x1xf32> to vector<2x4x16xf32>
    %285 = vector.broadcast %282 : vector<2x1x16xf32> to vector<2x4x16xf32>
    %286 = arith.mulf %284, %285 : vector<2x4x16xf32>
    %287 = arith.addf %279, %286 : vector<2x4x16xf32>
    %c7_100 = arith.constant 7 : index
    %c0_101 = arith.constant 0 : index
    %c0_102 = arith.constant 0 : index
    %288 = vector.load %arg9[%c7_100, %c0_101, %c0_102] : memref<12x4x1xf32, #tpu.memory_space<vmem>>, vector<1x4x1xf32>
    %289 = vector.shape_cast %288 : vector<1x4x1xf32> to vector<4x1xf32>
    %290 = vector.extract_strided_slice %228 {offsets = [0, 2, 0], sizes = [2, 1, 16], strides = [1, 1, 1]} : vector<2x4x16xf32> to vector<2x1x16xf32>
    %291 = vector.shape_cast %289 : vector<4x1xf32> to vector<1x4x1xf32>
    %292 = vector.broadcast %291 : vector<1x4x1xf32> to vector<2x4x16xf32>
    %293 = vector.broadcast %290 : vector<2x1x16xf32> to vector<2x4x16xf32>
    %294 = arith.mulf %292, %293 : vector<2x4x16xf32>
    %295 = arith.addf %287, %294 : vector<2x4x16xf32>
    %c8_103 = arith.constant 8 : index
    %c0_104 = arith.constant 0 : index
    %c0_105 = arith.constant 0 : index
    %296 = vector.load %arg9[%c8_103, %c0_104, %c0_105] : memref<12x4x1xf32, #tpu.memory_space<vmem>>, vector<1x4x1xf32>
    %297 = vector.shape_cast %296 : vector<1x4x1xf32> to vector<4x1xf32>
    %298 = vector.extract_strided_slice %232 {offsets = [0, 2, 0], sizes = [2, 1, 16], strides = [1, 1, 1]} : vector<2x4x16xf32> to vector<2x1x16xf32>
    %299 = vector.shape_cast %297 : vector<4x1xf32> to vector<1x4x1xf32>
    %300 = vector.broadcast %299 : vector<1x4x1xf32> to vector<2x4x16xf32>
    %301 = vector.broadcast %298 : vector<2x1x16xf32> to vector<2x4x16xf32>
    %302 = arith.mulf %300, %301 : vector<2x4x16xf32>
    %303 = arith.addf %295, %302 : vector<2x4x16xf32>
    %c9_106 = arith.constant 9 : index
    %c0_107 = arith.constant 0 : index
    %c0_108 = arith.constant 0 : index
    %304 = vector.load %arg9[%c9_106, %c0_107, %c0_108] : memref<12x4x1xf32, #tpu.memory_space<vmem>>, vector<1x4x1xf32>
    %305 = vector.shape_cast %304 : vector<1x4x1xf32> to vector<4x1xf32>
    %306 = vector.extract_strided_slice %230 {offsets = [0, 3, 0], sizes = [2, 1, 16], strides = [1, 1, 1]} : vector<2x4x16xf32> to vector<2x1x16xf32>
    %307 = vector.shape_cast %305 : vector<4x1xf32> to vector<1x4x1xf32>
    %308 = vector.broadcast %307 : vector<1x4x1xf32> to vector<2x4x16xf32>
    %309 = vector.broadcast %306 : vector<2x1x16xf32> to vector<2x4x16xf32>
    %310 = arith.mulf %308, %309 : vector<2x4x16xf32>
    %311 = arith.addf %303, %310 : vector<2x4x16xf32>
    %c10_109 = arith.constant 10 : index
    %c0_110 = arith.constant 0 : index
    %c0_111 = arith.constant 0 : index
    %312 = vector.load %arg9[%c10_109, %c0_110, %c0_111] : memref<12x4x1xf32, #tpu.memory_space<vmem>>, vector<1x4x1xf32>
    %313 = vector.shape_cast %312 : vector<1x4x1xf32> to vector<4x1xf32>
    %314 = vector.extract_strided_slice %228 {offsets = [0, 3, 0], sizes = [2, 1, 16], strides = [1, 1, 1]} : vector<2x4x16xf32> to vector<2x1x16xf32>
    %315 = vector.shape_cast %313 : vector<4x1xf32> to vector<1x4x1xf32>
    %316 = vector.broadcast %315 : vector<1x4x1xf32> to vector<2x4x16xf32>
    %317 = vector.broadcast %314 : vector<2x1x16xf32> to vector<2x4x16xf32>
    %318 = arith.mulf %316, %317 : vector<2x4x16xf32>
    %319 = arith.addf %311, %318 : vector<2x4x16xf32>
    %c11_112 = arith.constant 11 : index
    %c0_113 = arith.constant 0 : index
    %c0_114 = arith.constant 0 : index
    %320 = vector.load %arg9[%c11_112, %c0_113, %c0_114] : memref<12x4x1xf32, #tpu.memory_space<vmem>>, vector<1x4x1xf32>
    %321 = vector.shape_cast %320 : vector<1x4x1xf32> to vector<4x1xf32>
    %322 = vector.extract_strided_slice %232 {offsets = [0, 3, 0], sizes = [2, 1, 16], strides = [1, 1, 1]} : vector<2x4x16xf32> to vector<2x1x16xf32>
    %323 = vector.shape_cast %321 : vector<4x1xf32> to vector<1x4x1xf32>
    %324 = vector.broadcast %323 : vector<1x4x1xf32> to vector<2x4x16xf32>
    %325 = vector.broadcast %322 : vector<2x1x16xf32> to vector<2x4x16xf32>
    %326 = arith.mulf %324, %325 : vector<2x4x16xf32>
    %327 = arith.addf %319, %326 : vector<2x4x16xf32>
    %cst_115 = arith.constant dense<0.000000e+00> : vector<2x4xf32>
    %328 = vector.multi_reduction <add>, %327, %cst_115 [2] : vector<2x4x16xf32> to vector<2x4xf32>
    %329 = vector.shape_cast %328 : vector<2x4xf32> to vector<2x4x1xf32>
    %330 = arith.mulf %327, %327 : vector<2x4x16xf32>
    %cst_116 = arith.constant dense<0.000000e+00> : vector<2x4xf32>
    %331 = vector.multi_reduction <add>, %330, %cst_116 [2] : vector<2x4x16xf32> to vector<2x4xf32>
    %332 = vector.shape_cast %331 : vector<2x4xf32> to vector<2x4x1xf32>
    %cst_117 = arith.constant dense<0.000000e+00> : vector<4x1xf32>
    %333 = vector.multi_reduction <add>, %329, %cst_117 [0] : vector<2x4x1xf32> to vector<4x1xf32>
    %334 = vector.shape_cast %333 : vector<4x1xf32> to vector<1x4x1xf32>
    %cst_118 = arith.constant dense<0.000000e+00> : vector<4x1xf32>
    %335 = vector.multi_reduction <add>, %332, %cst_118 [0] : vector<2x4x1xf32> to vector<4x1xf32>
    %336 = vector.shape_cast %335 : vector<4x1xf32> to vector<1x4x1xf32>
    %cst_119 = arith.constant 3.125000e-02 : f32
    %337 = vector.broadcast %cst_119 : f32 to vector<1x4x1xf32>
    %338 = arith.mulf %334, %337 : vector<1x4x1xf32>
    %cst_120 = arith.constant 3.125000e-02 : f32
    %339 = vector.broadcast %cst_120 : f32 to vector<1x4x1xf32>
    %340 = arith.mulf %336, %339 : vector<1x4x1xf32>
    %341 = arith.mulf %338, %338 : vector<1x4x1xf32>
    %342 = arith.subf %340, %341 : vector<1x4x1xf32>
    %cst_121 = arith.constant 0.000000e+00 : f32
    %343 = vector.broadcast %cst_121 : f32 to vector<1x4x1xf32>
    %344 = arith.maximumf %342, %343 : vector<1x4x1xf32>
    %345 = vector.broadcast %338 : vector<1x4x1xf32> to vector<2x4x16xf32>
    %346 = arith.subf %327, %345 : vector<2x4x16xf32>
    %cst_122 = arith.constant 9.99999974E-6 : f32
    %347 = vector.broadcast %cst_122 : f32 to vector<1x4x1xf32>
    %348 = arith.addf %344, %347 : vector<1x4x1xf32>
    %349 = math.rsqrt %348 : vector<1x4x1xf32>
    %c0_123 = arith.constant 0 : index
    %c0_124 = arith.constant 0 : index
    %350 = vector.load %arg10[%c0_123, %c0_124] : memref<4x1xf32, #tpu.memory_space<vmem>>, vector<4x1xf32>
    %351 = vector.shape_cast %350 : vector<4x1xf32> to vector<1x4x1xf32>
    %352 = arith.mulf %349, %351 : vector<1x4x1xf32>
    %353 = vector.broadcast %352 : vector<1x4x1xf32> to vector<2x4x16xf32>
    %354 = arith.mulf %346, %353 : vector<2x4x16xf32>
    %c0_125 = arith.constant 0 : index
    %c0_126 = arith.constant 0 : index
    %355 = vector.load %arg11[%c0_125, %c0_126] : memref<4x1xf32, #tpu.memory_space<vmem>>, vector<4x1xf32>
    %356 = vector.shape_cast %355 : vector<4x1xf32> to vector<1x4x1xf32>
    %357 = vector.broadcast %356 : vector<1x4x1xf32> to vector<2x4x16xf32>
    %358 = arith.addf %354, %357 : vector<2x4x16xf32>
    %359 = math.absf %358 : vector<2x4x16xf32>
    %cst_127 = arith.constant 0.231641889 : f32
    %360 = vector.broadcast %cst_127 : f32 to vector<2x4x16xf32>
    %361 = arith.mulf %360, %359 : vector<2x4x16xf32>
    %cst_128 = arith.constant 1.000000e+00 : f32
    %362 = vector.broadcast %cst_128 : f32 to vector<2x4x16xf32>
    %363 = arith.addf %362, %361 : vector<2x4x16xf32>
    %364 = tpu.reciprocal %363 {approx = true} : vector<2x4x16xf32> -> vector<2x4x16xf32>
    %365 = arith.mulf %363, %364 : vector<2x4x16xf32>
    %cst_129 = arith.constant 2.000000e+00 : f32
    %366 = vector.broadcast %cst_129 : f32 to vector<2x4x16xf32>
    %367 = arith.subf %366, %365 : vector<2x4x16xf32>
    %368 = arith.mulf %364, %367 : vector<2x4x16xf32>
    %cst_130 = arith.constant 1.06140542 : f32
    %369 = vector.broadcast %cst_130 : f32 to vector<2x4x16xf32>
    %370 = arith.mulf %369, %368 : vector<2x4x16xf32>
    %cst_131 = arith.constant -1.45315206 : f32
    %371 = vector.broadcast %cst_131 : f32 to vector<2x4x16xf32>
    %372 = arith.addf %370, %371 : vector<2x4x16xf32>
    %373 = arith.mulf %372, %368 : vector<2x4x16xf32>
    %cst_132 = arith.constant 1.42141378 : f32
    %374 = vector.broadcast %cst_132 : f32 to vector<2x4x16xf32>
    %375 = arith.addf %373, %374 : vector<2x4x16xf32>
    %376 = arith.mulf %375, %368 : vector<2x4x16xf32>
    %cst_133 = arith.constant -0.284496725 : f32
    %377 = vector.broadcast %cst_133 : f32 to vector<2x4x16xf32>
    %378 = arith.addf %376, %377 : vector<2x4x16xf32>
    %379 = arith.mulf %378, %368 : vector<2x4x16xf32>
    %cst_134 = arith.constant 0.254829586 : f32
    %380 = vector.broadcast %cst_134 : f32 to vector<2x4x16xf32>
    %381 = arith.addf %379, %380 : vector<2x4x16xf32>
    %382 = arith.mulf %381, %368 : vector<2x4x16xf32>
    %cst_135 = arith.constant -5.000000e-01 : f32
    %383 = vector.broadcast %cst_135 : f32 to vector<2x4x16xf32>
    %384 = arith.mulf %383, %358 : vector<2x4x16xf32>
    %385 = arith.mulf %384, %358 : vector<2x4x16xf32>
    %386 = math.exp %385 : vector<2x4x16xf32>
    %387 = arith.mulf %382, %386 : vector<2x4x16xf32>
    %cst_136 = arith.constant 1.000000e+00 : f32
    %388 = vector.broadcast %cst_136 : f32 to vector<2x4x16xf32>
    %389 = arith.subf %388, %387 : vector<2x4x16xf32>
    %cst_137 = arith.constant 0.000000e+00 : f32
    %390 = vector.broadcast %cst_137 : f32 to vector<2x4x16xf32>
    %391 = arith.cmpf olt, %358, %390 : vector<2x4x16xf32>
    %cst_138 = arith.constant 0.000000e+00 : f32
    %392 = vector.broadcast %cst_138 : f32 to vector<2x4x16xf32>
    %393 = arith.subf %392, %389 : vector<2x4x16xf32>
    %394 = arith.select %391, %393, %389 : vector<2x4x16xi1>, vector<2x4x16xf32>
    %cst_139 = arith.constant 5.000000e-01 : f32
    %395 = vector.broadcast %cst_139 : f32 to vector<2x4x16xf32>
    %396 = arith.mulf %395, %358 : vector<2x4x16xf32>
    %cst_140 = arith.constant 1.000000e+00 : f32
    %397 = vector.broadcast %cst_140 : f32 to vector<2x4x16xf32>
    %398 = arith.addf %397, %394 : vector<2x4x16xf32>
    %399 = arith.mulf %396, %398 : vector<2x4x16xf32>
    %400 = vector.extract_strided_slice %55 {offsets = [0, 0], sizes = [4, 1], strides = [1, 1]} : vector<4x2xf32> to vector<4x1xf32>
    %401 = vector.shape_cast %400 : vector<4x1xf32> to vector<1x4x1xf32>
    %402 = vector.extract_strided_slice %55 {offsets = [0, 1], sizes = [4, 1], strides = [1, 1]} : vector<4x2xf32> to vector<4x1xf32>
    %403 = vector.shape_cast %402 : vector<4x1xf32> to vector<1x4x1xf32>
    %404 = tpu.concatenate %401, %403 in 0 : vector<1x4x1xf32>, vector<1x4x1xf32> -> vector<2x4x1xf32>
    %405 = vector.broadcast %404 : vector<2x4x1xf32> to vector<2x4x16xf32>
    %406 = arith.mulf %399, %405 : vector<2x4x16xf32>
    %c0_141 = arith.constant 0 : index
    %c0_142 = arith.constant 0 : index
    %c0_143 = arith.constant 0 : index
    %407 = vector.load %arg12[%c0_141, %c0_142, %c0_143] : memref<2x4x16xf32, #tpu.memory_space<vmem>>, vector<2x4x16xf32>
    tpu.vector_store %arg12[%c0_141, %c0_142, %c0_143], %406 {strides = array<i32>} : memref<2x4x16xf32, #tpu.memory_space<vmem>>, vector<2x4x16xf32>,
    return
  }
}

</mosaic_0001>

<bundles_post_ra>
// kernel: tpu_custom_call.1
= control target key start
LH: loop header
LB: loop body
LE: loop exit
PB: predicated region body
PF: predicated region fallthrough
CT: control target
= control target key end

     0   :  { %s1134_s25 = smov 1   ;;  %v1135_v2 = vmov 0   ;;  %s1555_s0 = inlined_call_operand.vmem [shape: f32[2,4,16], index: 0, kind: input, shape index: {}]   ;;  %s1556_s1 = inlined_call_operand.vmem [shape: f32[1,2], index: 1, kind: input, shape index: {}]   ;;  %s1557_s2 = inlined_call_operand.vmem [shape: f32[32,1], index: 2, kind: input, shape index: {}]   ;;  %s1558_s3 = inlined_call_operand.vmem [shape: f32[32,1], index: 3, kind: input, shape index: {}]   ;;  %s1559_s4 = inlined_call_operand.vmem [shape: f32[4,32], index: 4, kind: input, shape index: {}]   ;;  %s1560_s5 = inlined_call_operand.vmem [shape: f32[4,1], index: 5, kind: input, shape index: {}]   ;;  %s1561_s6 = inlined_call_operand.vmem [shape: f32[12,4,1], index: 6, kind: input, shape index: {}]   ;;  %s1562_s7 = inlined_call_operand.vmem [shape: f32[4,1], index: 7, kind: input, shape index: {}]   ;;  %s1563_s8 = inlined_call_operand.vmem [shape: f32[4,1], index: 8, kind: input, shape index: {}]   ;;  %s1564_s9 = inlined_call_operand.vmem [shape: f32[12,4,1], index: 9, kind: input, shape index: {}]   ;;  %s1565_s10 = inlined_call_operand.vmem [shape: f32[4,1], index: 10, kind: input, shape index: {}]   ;;  %s1566_s11 = inlined_call_operand.vmem [shape: f32[4,1], index: 11, kind: input, shape index: {}]   ;;  %s1567_s12 = inlined_call_operand.hbm [shape: f32[2,4,16], index: 12, kind: output, shape index: {}]  }
   0x1   :  { %v1210_v0 = vld [vmem:[%s1555_s0] sm:$0xf]  ;;  %1074 = vset.pattern.permute.xlu0 %v1135_v2  ;;  %v1220_v3 = vld [vmem:[%s1555_s0 + $0x4] sm:$0xf]  ;;  %1075 = vset.pattern.permute.xlu1 %v1135_v2 }
   0x2   :  { %v321_v1 = vld [vmem:[%s1561_s6] sm:$0xf]  ;;  %303 = vrot.lane.b32.xlu1 %v1210_v0, %s1134_s25  ;;  %v1028_v4 = vld [vmem:[%s1561_s6 + $0x4] sm:$0xf] }
   0x3   :  { %324 = vperm.xlu0 %1074, %v321_v1  }
   0x6   :  { %305 = vrot.lane.b32.xlu1 %v1220_v3, %s1134_s25 }
   0x7   :  { %17 = vsyncpa [#allocation3], 0  ;;  %341 = vperm.xlu0 %1074, %v1028_v4   ;;  %v1029_v5 = vld [vmem:[%s1561_s6 + $0x8] sm:$0xf]  ;;  %s1136_s14 = smov 127   ;;  %v327_v16 = vlaneseq  ;;  %vm309_vm0 = vcmask 7168  }
   0x8   :  { %v1030_v6 = vld [vmem:[%s1561_s6 + $0xc] sm:$0xf]  ;;  %v1032_v7 = vld [vmem:[%s1561_s6 + $0x14] sm:$0xf]  ;;  %v1031_v8 = vld [vmem:[%s1561_s6 + $0x10] sm:$0xf] }
   0x9   :  { %v1034_v9 = vld [vmem:[%s1561_s6 + $0x1c] sm:$0xf]  ;;  %v1033_v10 = vld [vmem:[%s1561_s6 + $0x18] sm:$0xf]  ;;  %v1036_v11 = vld [vmem:[%s1561_s6 + $0x24] sm:$0xf] }
   0xa   :  { %312 = vrot.lane.b32.xlu1 %v1210_v0, %s1136_s14  ;;  %v1035_v12 = vld [vmem:[%s1561_s6 + $0x20] sm:$0xf]  ;;  %v1038_v13 = vld [vmem:[%s1561_s6 + $0x2c] sm:$0xf]  ;;  %v1037_v14 = vld [vmem:[%s1561_s6 + $0x28] sm:$0xf] }
   0xb   :  { %360 = vperm.xlu0 %1074, %v1029_v5   ;;  %v328_v18 = vshrl.u32 %v327_v16, 7  ;;  %vm318_vm1 = vcmask 121856   ;;  %vm546_vm2 = vcmask 125952   ;;  %vm561_vm3 = vcmask 1043456  }
   0xc   :  { %vm224_vm8 = vcmask 261120   ;;  %vm1138_vm9 = vmmov 0  }
   0xd   :  { %v1261_v20 = vsub.s32 0, %v328_v18  ;;  %v1271_v26 = vsub.s32 1, %v328_v18  ;;  %v1293_v48 = vsub.s32 2, %v328_v18 }
   0xe   :  { %379 = vperm.xlu1 %1075, %v1030_v6  }
   0xf   :  { %314 = vrot.lane.b32.xlu0 %v1220_v3, %s1136_s14  ;;  %v347_v22 = vrot.slane %v1210_v0, %v1261_v20  ;;  %v351_v31 = vrot.slane %v1220_v3, %v1261_v20  ;;  %v404_v44 = vrot.slane %v1210_v0, %v1271_v26  ;;  %v408_v52 = vrot.slane %v1220_v3, %v1271_v26 }
  0x10   :  { %v461_v62 = vrot.slane %v1210_v0, %v1293_v48 }
  0x12   :  { %417 = vperm.xlu1 %1075, %v1032_v7  }
  0x13   :  { %398 = vperm.xlu0 %1074, %v1031_v8   ;;  %v1307_v8 = vsub.s32 3, %v328_v18 }
  0x16   :  { %455 = vperm.xlu1 %1075, %v1034_v9  }
  0x17   :  { %436 = vperm.xlu0 %1074, %v1033_v10  }
  0x1a   :  { %493 = vperm.xlu1 %1075, %v1036_v11   ;;  %v465_v11 = vrot.slane %v1220_v3, %v1293_v48 }
  0x1b   :  { %474 = vperm.xlu0 %1074, %v1035_v12  }
  0x1e   :  { %531 = vperm.xlu1 %1075, %v1038_v13  }
  0x1f   :  { %512 = vperm.xlu0 %1074, %v1037_v14  }
  0x74   :  { %v304_v15 = vpop.permute.xlu1 %303 }
  0x75   :  { %v1266_v23 = vsel %vm309_vm0, 0.0, %v304_v15 }
  0x76   :  { %v330_v28 = vrot.slane %v1266_v23, %v1261_v20  ;;  %v385_v37 = vrot.slane %v1266_v23, %v1271_v26  ;;  %v442_v1 = vrot.slane %v1266_v23, %v1293_v48  ;;  %v499_v18 = vrot.slane %v1266_v23, %v1307_v8 }
  0x77   :  { %v522_v23 = vrot.slane %v1220_v3, %v1307_v8 }
  0x78   :  { %v306_v17 = vpop.permute.xlu1 %305 }
  0x79   :  { %v1274_v27 = vsel %vm309_vm0, 0.0, %v306_v17 }
  0x7a   :  { %v334_v35 = vrot.slane %v1274_v27, %v1261_v20  ;;  %v389_v50 = vrot.slane %v1274_v27, %v1271_v26  ;;  %v446_v12 = vrot.slane %v1274_v27, %v1293_v48 }
  0x7c   :  { %v313_v21 = vpop.permute.xlu1 %312 }
  0x7d   :  { %v1269_v24 = vsel %vm318_vm1, %v313_v21, 0.0 }
  0x7e   :  { %v325_v19 = vpop.permute.xlu0 %324  ;;  %v366_v30 = vrot.slane %v1269_v24, %v1261_v20  ;;  %v423_v55 = vrot.slane %v1269_v24, %v1271_v26  ;;  %v480_v16 = vrot.slane %v1269_v24, %v1293_v48 }
  0x7f   :  { %v335_v33 = vmul.f32 %v330_v28, %v325_v19  ;;  %v336_v45 = vmul.f32 %v334_v35, %v325_v19  ;;  %v518_v28 = vrot.slane %v1210_v0, %v1307_v8  ;;  %v537_v0 = vrot.slane %v1269_v24, %v1307_v8 }
  0x82   :  { %v342_v25 = vpop.permute.xlu0 %341 }
  0x83   :  { %v352_v29 = vmul.f32 %v347_v22, %v342_v25  ;;  %v353_v39 = vmul.f32 %v351_v31, %v342_v25 }
  0x85   :  { %v354_v36 = vadd.f32 %v352_v29, %v335_v33  ;;  %v355_v49 = vadd.f32 %v353_v39, %v336_v45 }
  0x86   :  { %v361_v32 = vpop.permute.xlu0 %360 }
  0x87   :  { %v371_v34 = vmul.f32 %v366_v30, %v361_v32 }
  0x89   :  { %v380_v38 = vpop.permute.xlu1 %379  ;;  %v373_v41 = vadd.f32 %v371_v34, %v354_v36  ;;  %v503_v34 = vrot.slane %v1274_v27, %v1307_v8 }
  0x8a   :  { %v315_v40 = vpop.permute.xlu0 %314  ;;  %v390_v42 = vmul.f32 %v385_v37, %v380_v38  ;;  %v391_v57 = vmul.f32 %v389_v50, %v380_v38 }
  0x8b   :  { %v1287_v43 = vsel %vm318_vm1, %v315_v40, 0.0 }
  0x8c   :  { %v370_v46 = vrot.slane %v1287_v43, %v1261_v20  ;;  %v392_v54 = vadd.f32 %v390_v42, %v373_v41  ;;  %v427_v58 = vrot.slane %v1287_v43, %v1271_v26  ;;  %v484_v31 = vrot.slane %v1287_v43, %v1293_v48 }
  0x8d   :  { %v418_v47 = vpop.permute.xlu1 %417 }
  0x8e   :  { %v372_v51 = vmul.f32 %v370_v46, %v361_v32  ;;  %v399_v53 = vpop.permute.xlu0 %398  ;;  %v428_v60 = vmul.f32 %v423_v55, %v418_v47  ;;  %v429_v9 = vmul.f32 %v427_v58, %v418_v47  ;;  %v541_v46 = vrot.slane %v1287_v43, %v1307_v8  ;;  %v44_v58 = vld [vmem:[%s1557_s2 + $0x8] sm:$0xff] }
  0x8f   :  { %v409_v56 = vmul.f32 %v404_v44, %v399_v53  ;;  %v410_v4 = vmul.f32 %v408_v52, %v399_v53 }
  0x90   :  { %v374_v59 = vadd.f32 %v372_v51, %v355_v49 }
  0x91   :  { %v411_v61 = vadd.f32 %v409_v56, %v392_v54  ;;  %v456_v63 = vpop.permute.xlu1 %455  ;;  %v46_v56 = vld [vmem:[%s1557_s2 + $0x18] sm:$0xff] }
  0x92   :  { %v393_v2 = vadd.f32 %v391_v57, %v374_v59  ;;  %v437_v5 = vpop.permute.xlu0 %436  ;;  %v466_v13 = vmul.f32 %v461_v62, %v456_v63  ;;  %v467_v29 = vmul.f32 %v465_v11, %v456_v63  ;;  %v80_v57 = vld [vmem:[%s1558_s3 + $0x18] sm:$0xff]  ;;  %v45_v59 = vld [vmem:[%s1557_s2 + $0x10] sm:$0xff]  ;;  %v77_v62 = vld [vmem:[%s1558_s3] sm:$0xff] }
  0x93   :  { %v430_v6 = vadd.f32 %v428_v60, %v411_v61  ;;  %v447_v7 = vmul.f32 %v442_v1, %v437_v5  ;;  %v448_v19 = vmul.f32 %v446_v12, %v437_v5  ;;  %v43_v60 = vld [vmem:[%s1557_s2] sm:$0xff]  ;;  %v79_v61 = vld [vmem:[%s1558_s3 + $0x10] sm:$0xff]  ;;  %v78_v63 = vld [vmem:[%s1558_s3 + $0x8] sm:$0xff]  ;;  %v1137_v5 = vmov 0.0  }
  0x94   :  { %v412_v10 = vadd.f32 %v410_v4, %v393_v2  ;;  %v586_v1 = vld [vmem:[%s1563_s8] sm:$0xf]  ;;  %v1039_v2 = vld [vmem:[%s1564_s9 + $0x4] sm:$0xf]  ;;  %v1041_v4 = vld [vmem:[%s1564_s9 + $0xc] sm:$0xf]  ;;  %1055 = vmatprep.subr.mxu0 %v1137_v5  ;;  %1063 = vmatprep.mubr.msk.f32.mxu0 %vm1138_vm9, %v1137_v5 }
  0x95   :  { %v449_v14 = vadd.f32 %v447_v7, %v430_v6  ;;  %v494_v15 = vpop.permute.xlu1 %493 }
  0x96   :  { %v431_v17 = vadd.f32 %v429_v9, %v412_v10  ;;  %v475_v21 = vpop.permute.xlu0 %474  ;;  %v504_v32 = vmul.f32 %v499_v18, %v494_v15  ;;  %v505_v41 = vmul.f32 %v503_v34, %v494_v15 }
  0x97   :  { %v468_v22 = vadd.f32 %v466_v13, %v449_v14  ;;  %v485_v25 = vmul.f32 %v480_v16, %v475_v21  ;;  %v486_v36 = vmul.f32 %v484_v31, %v475_v21  ;;  %v1026_v14 = vld [vmem:[%s1556_s1] ss:$0 sm:$0xff] }
  0x98   :  { %v450_v30 = vadd.f32 %v448_v19, %v431_v17 }
  0x99   :  { %v487_v33 = vadd.f32 %v485_v25, %v468_v22  ;;  %v532_v37 = vpop.permute.xlu1 %531 }
  0x9a   :  { %v469_v35 = vadd.f32 %v467_v29, %v450_v30  ;;  %v513_v38 = vpop.permute.xlu0 %512  ;;  %v542_v44 = vmul.f32 %v537_v0, %v532_v37  ;;  %v543_v50 = vmul.f32 %v541_v46, %v532_v37 }
  0x9b   :  { %v506_v39 = vadd.f32 %v504_v32, %v487_v33  ;;  %v523_v40 = vmul.f32 %v518_v28, %v513_v38  ;;  %v524_v47 = vmul.f32 %v522_v23, %v513_v38 }
  0x9c   :  { %v488_v42 = vadd.f32 %v486_v36, %v469_v35 }
  0x9d   :  { %v525_v45 = vadd.f32 %v523_v40, %v506_v39 }
  0x9e   :  { %v507_v27 = vadd.f32 %v505_v41, %v488_v42 }
  0x9f   :  { %v1329_v49 = vadd.f32 %v542_v44, %v525_v45 }
  0xa0   :  { %v526_v3 = vadd.f32 %v524_v47, %v507_v27 }
  0xa1   :  { %v547_v51 = vsel %vm546_vm2, %v1329_v49, 0.0  ;;  %v553_v24 = vmul.f32 %v1329_v49, %v1329_v49 }
  0xa2   :  { %548 = vadd.xlane.f32.xlu0 %v547_v51  ;;  %v1335_v52 = vadd.f32 %v543_v50, %v526_v3 }
  0xa3   :  { %v555_v43 = vsel %vm546_vm2, %v553_v24, 0.0 }
  0xa4   :  { %v550_v53 = vsel %vm546_vm2, %v1335_v52, 0.0  ;;  %v554_v54 = vmul.f32 %v1335_v52, %v1335_v52 }
  0xa5   :  { %551 = vadd.xlane.f32.xlu1 %v550_v53 }
  0xa6   :  { %556 = vadd.xlane.f32.xlu0 %v555_v43  ;;  %v558_v55 = vsel %vm546_vm2, %v554_v54, 0.0 }
  0xaa   :  { %559 = vadd.xlane.f32.xlu0 %v558_v55  ;;  %v577_v55 = vld [vmem:[%s1562_s7] sm:$0xf] }
  0xb6   :  { %64 = vperm.xlu1 %1075, %v46_v56  }
  0xba   :  { %98 = vperm.xlu1 %1075, %v80_v57  }
  0xbe   :  { %54 = vperm.xlu1 %1075, %v44_v58  }
  0xc0   :  { %59 = vperm.xlu0 %1074, %v45_v59  }
  0xc2   :  { %49 = vperm.xlu1 %1075, %v43_v60  }
  0xc4   :  { %93 = vperm.xlu0 %1074, %v79_v61  }
  0xc6   :  { %83 = vperm.xlu1 %1075, %v77_v62  }
  0xc8   :  { %88 = vperm.xlu0 %1074, %v78_v63   ;;  %v668_v63 = vld [vmem:[%s1564_s9] sm:$0xf] }
  0xca   :  { %589 = vperm.xlu1 %1075, %v586_v1  }
  0xce   :  { %688 = vperm.xlu1 %1075, %v1039_v2   ;;  %v1040_v2 = vld [vmem:[%s1564_s9 + $0x8] sm:$0xf] }
  0xd2   :  { %726 = vperm.xlu1 %1075, %v1041_v4  }
 0x12b   :  { %v549_v6 = vpop.xlane.xlu0 %548 }
 0x12c   :  { %v562_v9 = vsel %vm561_vm3, %v549_v6, 0.0 }
 0x12e   :  { %v552_v7 = vpop.xlane.xlu1 %551 }
 0x12f   :  { %v563_v10 = vsel %vm561_vm3, %v552_v7, 0.0  ;;  %v557_v11 = vpop.xlane.xlu0 %556 }
 0x130   :  { %v564_v12 = vadd.f32 %v563_v10, %v562_v9  ;;  %v565_v17 = vsel %vm561_vm3, %v557_v11, 0.0 }
 0x132   :  { %v65_v13 = vpop.permute.xlu1 %64  ;;  %v1382_v15 = vmul.f32 0.03125, %v564_v12 }
 0x133   :  { %v560_v16 = vpop.xlane.xlu0 %559  ;;  %v76_v21 = vmul.f32 %v1026_v14, %v65_v13 }
 0x134   :  { %v566_v19 = vsel %vm561_vm3, %v560_v16, 0.0  ;;  %v570_v25 = vmul.f32 %v1382_v15, %v1382_v15 }
 0x135   :  { %v567_v18 = vadd.f32 %v566_v19, %v565_v17 }
 0x136   :  { %v99_v22 = vpop.permute.xlu1 %98 }
 0x137   :  { %v569_v28 = vmul.f32 0.03125, %v567_v18  ;;  %v1388_v29 = vadd.f32 %v99_v22, %v76_v21 }
 0x139   :  { %v571_v30 = vsub.f32 %v569_v28, %v570_v25  ;;  %v108_v31 = vand.u32 2147483647, %v1388_v29  ;;  %v172_v57 = vmul.f32 -0.5, %v1388_v29  ;;  %vm196_vm4 = vcmp.lt.f32.partialorder %v1388_v29, 0.0 }
 0x13a   :  { %v55_v32 = vpop.permute.xlu1 %54 }
 0x13b   :  { %v572_v33 = vmax.f32 %v571_v30, 0.0  ;;  %v112_v34 = vmul.f32 0.23164189, %v108_v31  ;;  %v60_v35 = vpop.permute.xlu0 %59  ;;  %v74_v41 = vmul.f32 %v1026_v14, %v55_v32  ;;  %v176_v62 = vmul.f32 %v172_v57, %v1388_v29 }
 0x13c   :  { %v75_v23 = vmul.f32 %v1026_v14, %v60_v35 }
 0x13d   :  { %v575_v36 = vadd.f32 1e-05, %v572_v33  ;;  %v116_v37 = vadd.f32 1.0, %v112_v34  ;;  %v183_v4 = vmul.f32 1.442695, %v176_v62 }
 0x13e   :  { %v50_v38 = vpop.permute.xlu1 %49 }
 0x13f   :  { %1076 = vrsqrt.f32 %v575_v36  ;;  %v94_v0 = vpop.permute.xlu0 %93  ;;  %v73_v40 = vmul.f32 %v1026_v14, %v50_v38 }
 0x140   :  { %1078 = vrcp.f32 %v116_v37  ;;  %v1391_v39 = vadd.f32 %v94_v0, %v75_v23 }
 0x142   :  { %v107_v42 = vand.u32 2147483647, %v1391_v39  ;;  %v84_v44 = vpop.permute.xlu1 %83  ;;  %v171_v6 = vmul.f32 -0.5, %v1391_v39  ;;  %vm195_vm5 = vcmp.lt.f32.partialorder %v1391_v39, 0.0 }
 0x143   :  { %v1394_v45 = vadd.f32 %v84_v44, %v73_v40  ;;  %v89_v46 = vpop.permute.xlu0 %88 }
 0x144   :  { %v111_v27 = vmul.f32 0.23164189, %v107_v42  ;;  %v1396_v47 = vadd.f32 %v89_v46, %v74_v41  ;;  %v175_v16 = vmul.f32 %v171_v6, %v1391_v39 }
 0x145   :  { %v105_v50 = vand.u32 2147483647, %v1394_v45  ;;  %v169_v12 = vmul.f32 -0.5, %v1394_v45  ;;  %vm193_vm6 = vcmp.lt.f32.partialorder %v1394_v45, 0.0 }
 0x146   :  { %v115_v3 = vadd.f32 1.0, %v111_v27  ;;  %v106_v51 = vand.u32 2147483647, %v1396_v47  ;;  %v170_v21 = vmul.f32 -0.5, %v1396_v47  ;;  %v181_v32 = vmul.f32 1.442695, %v175_v16 }
 0x147   :  { %v109_v24 = vmul.f32 0.23164189, %v105_v50  ;;  %v173_v30 = vmul.f32 %v169_v12, %v1394_v45  ;;  %vm194_vm7 = vcmp.lt.f32.partialorder %v1396_v47, 0.0 }
 0x148   :  { %1080 = vrcp.f32 %v115_v3  ;;  %v110_v53 = vmul.f32 0.23164189, %v106_v51 }
 0x149   :  { %v113_v43 = vadd.f32 1.0, %v109_v24  ;;  %v177_v0 = vmul.f32 1.442695, %v173_v30 }
 0x14a   :  { %v114_v54 = vadd.f32 1.0, %v110_v53 }
 0x14b   :  { %1082 = vrcp.f32 %v113_v43 }
 0x14c   :  { %v1077_v56 = vpop.eup %1076  ;;  %1084 = vrcp.f32 %v114_v54 }
 0x14d   :  { %v1079_v58 = vpop.eup %1078  ;;  %v578_v59 = vmul.f32 %v1077_v56, %v577_v55  ;;  %1086 = vpow2.f32 %v183_v4 }
 0x14e   :  { %v124_v60 = vmul.f32 %v1079_v58, %v116_v37  ;;  %v174_v37 = vmul.f32 %v170_v21, %v1396_v47  ;;  %1088 = vpow2.f32 %v181_v32 }
 0x14f   :  { %581 = vperm.xlu0 %1074, %v578_v59   ;;  %1090 = vpow2.f32 %v177_v0 }
 0x150   :  { %v128_v61 = vsub.f32 2.0, %v124_v60  ;;  %v179_v46 = vmul.f32 1.442695, %v174_v37  ;;  %v207_v37 = vmul.f32 0.5, %v1391_v39  ;;  %v205_v39 = vmul.f32 0.5, %v1394_v45 }
 0x151   :  { %v574_v45 = vsub.f32 %v1335_v52, %v1382_v15 }
 0x152   :  { %v132_v1 = vmul.f32 %v1079_v58, %v128_v61  ;;  %1092 = vpow2.f32 %v179_v46 }
 0x153   :  { %671 = vperm.xlu0 %1074, %v668_v63  }
 0x154   :  { %v136_v7 = vmul.f32 1.0614054, %v132_v1 }
 0x155   :  { %v1081_v9 = vpop.eup %1080 }
 0x156   :  { %v123_v10 = vmul.f32 %v1081_v9, %v115_v3  ;;  %v140_v11 = vadd.f32 -1.4531521, %v136_v7 }
 0x157   :  { %707 = vperm.xlu0 %1074, %v1040_v2  }
 0x158   :  { %v1083_v13 = vpop.eup %1082  ;;  %v127_v14 = vsub.f32 2.0, %v123_v10  ;;  %v144_v17 = vmul.f32 %v140_v11, %v132_v1 }
 0x159   :  { %v121_v19 = vmul.f32 %v1083_v13, %v113_v43  ;;  %v1085_v18 = vpop.eup %1084 }
 0x15a   :  { %v131_v22 = vmul.f32 %v1081_v9, %v127_v14  ;;  %v148_v25 = vadd.f32 1.4214138, %v144_v17  ;;  %v122_v31 = vmul.f32 %v1085_v18, %v114_v54  ;;  %v1087_v55 = vpop.eup %1086 }
 0x15b   :  { %v125_v28 = vsub.f32 2.0, %v121_v19  ;;  %v1089_v12 = vpop.eup %1088 }
 0x15c   :  { %v152_v33 = vmul.f32 %v148_v25, %v132_v1  ;;  %v135_v34 = vmul.f32 1.0614054, %v131_v22  ;;  %v126_v36 = vsub.f32 2.0, %v122_v31 }
 0x15d   :  { %v129_v35 = vmul.f32 %v1083_v13, %v125_v28  ;;  %v208_v13 = vmul.f32 0.5, %v1388_v29  ;;  %v1091_v28 = vpop.eup %1090 }
 0x15e   :  { %v156_v23 = vadd.f32 -0.28449672, %v152_v33  ;;  %v139_v38 = vadd.f32 -1.4531521, %v135_v34  ;;  %v130_v40 = vmul.f32 %v1085_v18, %v126_v36 }
 0x15f   :  { %v133_v41 = vmul.f32 1.0614054, %v129_v35  ;;  %v1093_v33 = vpop.eup %1092 }
 0x160   :  { %v160_v42 = vmul.f32 %v156_v23, %v132_v1  ;;  %v143_v44 = vmul.f32 %v139_v38, %v131_v22  ;;  %v134_v27 = vmul.f32 1.0614054, %v130_v40 }
 0x161   :  { %v137_v50 = vadd.f32 -1.4531521, %v133_v41 }
 0x162   :  { %v164_v3 = vadd.f32 0.2548296, %v160_v42  ;;  %v147_v51 = vadd.f32 1.4214138, %v143_v44  ;;  %v138_v24 = vadd.f32 -1.4531521, %v134_v27 }
 0x163   :  { %v141_v53 = vmul.f32 %v137_v50, %v129_v35  ;;  %v206_v44 = vmul.f32 0.5, %v1396_v47  ;;  %v573_v47 = vsub.f32 %v1329_v49, %v1382_v15 }
 0x164   :  { %v168_v43 = vmul.f32 %v164_v3, %v132_v1  ;;  %v151_v54 = vmul.f32 %v147_v51, %v131_v22  ;;  %v142_v56 = vmul.f32 %v138_v24, %v130_v40  ;;  %v217_v51 = vld [vmem:[%s1559_s4] sm:$0xf] }
 0x165   :  { %v145_v57 = vadd.f32 1.4214138, %v141_v53 }
 0x166   :  { %v188_v58 = vmul.f32 %v1087_v55, %v168_v43  ;;  %v155_v59 = vadd.f32 -0.28449672, %v151_v54  ;;  %v146_v60 = vadd.f32 1.4214138, %v142_v56  ;;  %v590_v54 = vpop.permute.xlu1 %589 }
 0x167   :  { %v149_v61 = vmul.f32 %v145_v57, %v129_v35 }
 0x168   :  { %v192_v62 = vsub.f32 1.0, %v188_v58  ;;  %v159_v63 = vmul.f32 %v155_v59, %v131_v22  ;;  %v150_v2 = vmul.f32 %v146_v60, %v130_v40 }
 0x169   :  { %v153_v4 = vadd.f32 -0.28449672, %v149_v61 }
 0x16a   :  { %v200_v6 = vsub.f32 0.0, %v192_v62  ;;  %v163_v7 = vadd.f32 0.2548296, %v159_v63  ;;  %v154_v9 = vadd.f32 -0.28449672, %v150_v2 }
 0x16b   :  { %v157_v10 = vmul.f32 %v153_v4, %v129_v35 }
 0x16c   :  { %v204_v1 = vsel %vm196_vm4, %v200_v6, %v192_v62  ;;  %v167_v11 = vmul.f32 %v163_v7, %v131_v22  ;;  %v158_v16 = vmul.f32 %v154_v9, %v130_v40 }
 0x16d   :  { %v212_v14 = vadd.f32 1.0, %v204_v1  ;;  %v161_v17 = vadd.f32 0.2548296, %v157_v10 }
 0x16e   :  { %v187_v19 = vmul.f32 %v1089_v12, %v167_v11  ;;  %v162_v18 = vadd.f32 0.2548296, %v158_v16 }
 0x16f   :  { %v216_v21 = vmul.f32 %v212_v14, %v208_v13  ;;  %v165_v25 = vmul.f32 %v161_v17, %v129_v35 }
 0x170   :  { %v191_v30 = vsub.f32 1.0, %v187_v19  ;;  %v166_v31 = vmul.f32 %v162_v18, %v130_v40 }
 0x171   :  { %1056 = vmatpush3.msra.mxu0 %v216_v21  ;;  %v185_v32 = vmul.f32 %v1091_v28, %v165_v25 }
 0x172   :  { %1057 = vmatprep.subr.mxu0 %v1137_v5  ;;  %v199_v34 = vsub.f32 0.0, %v191_v30  ;;  %v186_v22 = vmul.f32 %v1093_v33, %v166_v31 }
 0x173   :  { %v189_v29 = vsub.f32 1.0, %v185_v32 }
 0x174   :  { %v203_v36 = vsel %vm195_vm5, %v199_v34, %v191_v30  ;;  %v190_v38 = vsub.f32 1.0, %v186_v22 }
 0x175   :  { %v211_v23 = vadd.f32 1.0, %v203_v36  ;;  %v197_v0 = vsub.f32 0.0, %v189_v29 }
 0x176   :  { %v198_v41 = vsub.f32 0.0, %v190_v38 }
 0x177   :  { %v215_v35 = vmul.f32 %v211_v23, %v207_v37  ;;  %v201_v40 = vsel %vm193_vm6, %v197_v0, %v189_v29 }
 0x178   :  { %v202_v42 = vsel %vm194_vm7, %v198_v41, %v190_v38  ;;  %v209_v27 = vadd.f32 1.0, %v201_v40 }
 0x179   :  { %1058 = vmatpush3.msra.mxu0 %v215_v35  ;;  %v210_v46 = vadd.f32 1.0, %v202_v42 }
 0x17a   :  { %1059 = vmatprep.subr.mxu0 %v1137_v5  ;;  %v213_v3 = vmul.f32 %v209_v27, %v205_v39 }
 0x17b   :  { %v214_v50 = vmul.f32 %v210_v46, %v206_v44 }
 0x17d   :  { %1060 = vmatpush3.msra.mxu0 %v214_v50 }
 0x17e   :  { %1061 = vmatprep.subr.mxu0 %v1137_v5 }
 0x17f   :  { %1062 = vmatpush3.msra.mxu0 %v213_v3 }
 0x180   :  { %1064 = vmatmul.mubr.msk.f32.vlgmr.msra.gmra.mxu0 %vm224_vm8, %v217_v51 }
 0x1ca   :  { %v582_v24 = vpop.permute.xlu0 %581 }
 0x1cb   :  { %v584_v53 = vmul.f32 %v582_v24, %v573_v47  ;;  %v585_v43 = vmul.f32 %v582_v24, %v574_v45  ;;  %v1042_v24 = vld [vmem:[%s1564_s9 + $0x10] sm:$0xf] }
 0x1cd   :  { %v592_v55 = vadd.f32 %v590_v54, %v584_v53  ;;  %v593_v56 = vadd.f32 %v590_v54, %v585_v43  ;;  %v1043_v53 = vld [vmem:[%s1564_s9 + $0x14] sm:$0xf]  ;;  %v1044_v43 = vld [vmem:[%s1564_s9 + $0x18] sm:$0xf]  ;;  %v1045_v54 = vld [vmem:[%s1564_s9 + $0x1c] sm:$0xf] }
 0x1cf   :  { %v594_v57 = vand.u32 2147483647, %v592_v55  ;;  %v595_v58 = vand.u32 2147483647, %v593_v56  ;;  %v626_v5 = vmul.f32 -0.5, %v592_v55  ;;  %v627_v49 = vmul.f32 -0.5, %v593_v56 }
 0x1d0   :  { %vm638_vm10 = vcmp.lt.f32.partialorder %v592_v55, 0.0  ;;  %vm639_vm11 = vcmp.lt.f32.partialorder %v593_v56, 0.0  ;;  %v644_v50 = vmul.f32 0.5, %v592_v55  ;;  %v645_v3 = vmul.f32 0.5, %v593_v56 }
 0x1d1   :  { %v596_v59 = vmul.f32 0.23164189, %v594_v57  ;;  %v597_v60 = vmul.f32 0.23164189, %v595_v58  ;;  %v628_v6 = vmul.f32 %v626_v5, %v592_v55  ;;  %v629_v9 = vmul.f32 %v627_v49, %v593_v56  ;;  %v1046_v55 = vld [vmem:[%s1564_s9 + $0x20] sm:$0xf] }
 0x1d2   :  { %v1047_v56 = vld [vmem:[%s1564_s9 + $0x24] sm:$0xf]  ;;  %v1048_v57 = vld [vmem:[%s1564_s9 + $0x28] sm:$0xf]  ;;  %v1049_v58 = vld [vmem:[%s1564_s9 + $0x2c] sm:$0xf] }
 0x1d3   :  { %v598_v61 = vadd.f32 1.0, %v596_v59  ;;  %v599_v62 = vadd.f32 1.0, %v597_v60  ;;  %v630_v12 = vmul.f32 1.442695, %v628_v6  ;;  %v632_v14 = vmul.f32 1.442695, %v629_v9  ;;  %v672_v59 = vpop.permute.xlu0 %671  ;;  %v689_v60 = vpop.permute.xlu1 %688 }
 0x1d5   :  { %1094 = vrcp.f32 %v598_v61 }
 0x1d6   :  { %1096 = vrcp.f32 %v599_v62 }
 0x1d7   :  { %1098 = vpow2.f32 %v630_v12 }
 0x1d8   :  { %1100 = vpow2.f32 %v632_v14 }
 0x1e2   :  { %v1095_v63 = vpop.eup %1094 }
 0x1e3   :  { %v1097_v2 = vpop.eup %1096  ;;  %v602_v4 = vmul.f32 %v1095_v63, %v598_v61  ;;  %v708_v61 = vpop.permute.xlu0 %707 }
 0x1e4   :  { %v603_v52 = vmul.f32 %v1097_v2, %v599_v62  ;;  %v1099_v37 = vpop.eup %1098  ;;  %v727_v62 = vpop.permute.xlu1 %726 }
 0x1e5   :  { %v604_v15 = vsub.f32 2.0, %v602_v4  ;;  %v1101_v38 = vpop.eup %1100 }
 0x1e6   :  { %v605_v7 = vsub.f32 2.0, %v603_v52 }
 0x1e7   :  { %v606_v10 = vmul.f32 %v1095_v63, %v604_v15 }
 0x1e8   :  { %v607_v1 = vmul.f32 %v1097_v2, %v605_v7 }
 0x1e9   :  { %v608_v11 = vmul.f32 1.0614054, %v606_v10 }
 0x1ea   :  { %v609_v13 = vmul.f32 1.0614054, %v607_v1 }
 0x1eb   :  { %v610_v16 = vadd.f32 -1.4531521, %v608_v11 }
 0x1ec   :  { %v611_v17 = vadd.f32 -1.4531521, %v609_v13 }
 0x1ed   :  { %v612_v19 = vmul.f32 %v610_v16, %v606_v10 }
 0x1ee   :  { %v613_v21 = vmul.f32 %v611_v17, %v607_v1 }
 0x1ef   :  { %v614_v18 = vadd.f32 1.4214138, %v612_v19 }
 0x1f0   :  { %v615_v25 = vadd.f32 1.4214138, %v613_v21 }
 0x1f1   :  { %v616_v28 = vmul.f32 %v614_v18, %v606_v10 }
 0x1f2   :  { %v617_v30 = vmul.f32 %v615_v25, %v607_v1 }
 0x1f3   :  { %v618_v31 = vadd.f32 -0.28449672, %v616_v28 }
 0x1f4   :  { %v619_v32 = vadd.f32 -0.28449672, %v617_v30 }
 0x1f5   :  { %v620_v33 = vmul.f32 %v618_v31, %v606_v10 }
 0x1f6   :  { %v621_v34 = vmul.f32 %v619_v32, %v607_v1 }
 0x1f7   :  { %v622_v22 = vadd.f32 0.2548296, %v620_v33 }
 0x1f8   :  { %v623_v29 = vadd.f32 0.2548296, %v621_v34 }
 0x1f9   :  { %v624_v36 = vmul.f32 %v622_v22, %v606_v10 }
 0x1fa   :  { %v625_v23 = vmul.f32 %v623_v29, %v607_v1 }
 0x1fb   :  { %v634_v0 = vmul.f32 %v1099_v37, %v624_v36 }
 0x1fc   :  { %v635_v35 = vmul.f32 %v1101_v38, %v625_v23 }
 0x1fd   :  { %v636_v41 = vsub.f32 1.0, %v634_v0 }
 0x1fe   :  { %v637_v40 = vsub.f32 1.0, %v635_v35 }
 0x1ff   :  { %v640_v42 = vsub.f32 0.0, %v636_v41 }
 0x200   :  { %v641_v44 = vsub.f32 0.0, %v637_v40 }
 0x201   :  { %v642_v46 = vsel %vm638_vm10, %v640_v42, %v636_v41 }
 0x202   :  { %v643_v27 = vsel %vm639_vm11, %v641_v44, %v637_v40  ;;  %v646_v39 = vadd.f32 1.0, %v642_v46 }
 0x203   :  { %v647_v51 = vadd.f32 1.0, %v643_v27 }
 0x204   :  { %v1436_v47 = vmul.f32 %v646_v39, %v644_v50 }
 0x205   :  { %v1438_v45 = vmul.f32 %v647_v51, %v645_v3 }
 0x206   :  { %652 = vrot.lane.b32.xlu0 %v1436_v47, %s1134_s25  ;;  %v694_v9 = vrot.slane %v1436_v47, %v1261_v20  ;;  %v751_v22 = vrot.slane %v1436_v47, %v1271_v26  ;;  %v808_v3 = vrot.slane %v1436_v47, %v1293_v48 }
 0x207   :  { %654 = vrot.lane.b32.xlu1 %v1438_v45, %s1134_s25  ;;  %v698_v10 = vrot.slane %v1438_v45, %v1261_v20 }
 0x208   :  { %v699_v16 = vmul.f32 %v694_v9, %v689_v60  ;;  %v869_v9 = vrot.slane %v1438_v45, %v1307_v8 }
 0x209   :  { %v700_v17 = vmul.f32 %v698_v10, %v689_v60 }
 0x20a   :  { %662 = vrot.lane.b32.xlu0 %v1438_v45, %s1136_s14 }
 0x20b   :  { %660 = vrot.lane.b32.xlu1 %v1436_v47, %s1136_s14 }
 0x20e   :  { %745 = vperm.xlu0 %1074, %v1042_v24  }
 0x20f   :  { %764 = vperm.xlu1 %1075, %v1043_v53  }
 0x212   :  { %783 = vperm.xlu0 %1074, %v1044_v43  }
 0x213   :  { %802 = vperm.xlu1 %1075, %v1045_v54  }
 0x216   :  { %821 = vperm.xlu0 %1074, %v1046_v55  }
 0x217   :  { %840 = vperm.xlu1 %1075, %v1047_v56  }
 0x21a   :  { %859 = vperm.xlu0 %1074, %v1048_v57  }
 0x21b   :  { %878 = vperm.xlu1 %1075, %v1049_v58  }
 0x278   :  { %v653_v5 = vpop.permute.xlu0 %652 }
 0x279   :  { %v1473_v63 = vsel %vm309_vm0, 0.0, %v653_v5  ;;  %v655_v49 = vpop.permute.xlu1 %654 }
 0x27a   :  { %v1476_v2 = vsel %vm309_vm0, 0.0, %v655_v49  ;;  %v677_v4 = vrot.slane %v1473_v63, %v1261_v20  ;;  %v732_v25 = vrot.slane %v1473_v63, %v1271_v26  ;;  %v789_v40 = vrot.slane %v1473_v63, %v1293_v48 }
 0x27b   :  { %v681_v52 = vrot.slane %v1476_v2, %v1261_v20  ;;  %v736_v30 = vrot.slane %v1476_v2, %v1271_v26  ;;  %v793_v42 = vrot.slane %v1476_v2, %v1293_v48  ;;  %v850_v5 = vrot.slane %v1476_v2, %v1307_v8 }
 0x27c   :  { %v663_v15 = vpop.permute.xlu0 %662  ;;  %v682_v13 = vmul.f32 %v677_v4, %v672_v59  ;;  %v737_v33 = vmul.f32 %v732_v25, %v727_v62 }
 0x27d   :  { %v1483_v6 = vsel %vm318_vm1, %v663_v15, 0.0  ;;  %v661_v7 = vpop.permute.xlu1 %660  ;;  %v683_v14 = vmul.f32 %v681_v52, %v672_v59  ;;  %v738_v34 = vmul.f32 %v736_v30, %v727_v62  ;;  %v846_v62 = vrot.slane %v1473_v63, %v1307_v8 }
 0x27e   :  { %v717_v1 = vrot.slane %v1483_v6, %v1261_v20  ;;  %v1492_v11 = vsel %vm318_vm1, %v661_v7, 0.0  ;;  %v701_v18 = vadd.f32 %v699_v16, %v682_v13  ;;  %v774_v37 = vrot.slane %v1483_v6, %v1271_v26 }
 0x27f   :  { %v713_v12 = vrot.slane %v1492_v11, %v1261_v20  ;;  %v702_v28 = vadd.f32 %v700_v17, %v683_v14  ;;  %v755_v20 = vrot.slane %v1438_v45, %v1271_v26  ;;  %v770_v36 = vrot.slane %v1492_v11, %v1271_v26 }
 0x280   :  { %v719_v19 = vmul.f32 %v717_v1, %v708_v61  ;;  %v812_v26 = vrot.slane %v1438_v45, %v1293_v48  ;;  %v831_v55 = vrot.slane %v1483_v6, %v1293_v48  ;;  %v827_v56 = vrot.slane %v1492_v11, %v1293_v48 }
 0x281   :  { %v718_v21 = vmul.f32 %v713_v12, %v708_v61  ;;  %v865_v48 = vrot.slane %v1436_v47, %v1307_v8  ;;  %v884_v63 = vrot.slane %v1492_v11, %v1307_v8  ;;  %v888_v2 = vrot.slane %v1483_v6, %v1307_v8 }
 0x282   :  { %v721_v32 = vadd.f32 %v719_v19, %v702_v28 }
 0x283   :  { %v720_v31 = vadd.f32 %v718_v21, %v701_v18 }
 0x284   :  { %v740_v38 = vadd.f32 %v738_v34, %v721_v32 }
 0x285   :  { %v739_v23 = vadd.f32 %v737_v33, %v720_v31 }
 0x289   :  { %v746_v29 = vpop.permute.xlu0 %745 }
 0x28a   :  { %v756_v0 = vmul.f32 %v751_v22, %v746_v29  ;;  %v757_v35 = vmul.f32 %v755_v20, %v746_v29  ;;  %v765_v41 = vpop.permute.xlu1 %764  ;;  %v294_v20 = vpop.f32.mrf.mxu0  ;;  %v218_v22 = vld [vmem:[%s1560_s5] sm:$0xf] }
 0x28b   :  { %v775_v27 = vmul.f32 %v770_v36, %v765_v41  ;;  %v776_v50 = vmul.f32 %v774_v37, %v765_v41 }
 0x28c   :  { %v758_v44 = vadd.f32 %v756_v0, %v739_v23  ;;  %v759_v46 = vadd.f32 %v757_v35, %v740_v38  ;;  %v1065_v29 = vpop.f32.mrf.mxu0 }
 0x28d   :  { %v784_v39 = vpop.permute.xlu0 %783 }
 0x28e   :  { %v777_v51 = vadd.f32 %v775_v27, %v758_v44  ;;  %v778_v24 = vadd.f32 %v776_v50, %v759_v46  ;;  %v794_v53 = vmul.f32 %v789_v40, %v784_v39  ;;  %v795_v43 = vmul.f32 %v793_v42, %v784_v39  ;;  %v803_v54 = vpop.permute.xlu1 %802 }
 0x28f   :  { %v813_v59 = vmul.f32 %v808_v3, %v803_v54  ;;  %v814_v60 = vmul.f32 %v812_v26, %v803_v54  ;;  %v931_v3 = vld [vmem:[%s1566_s11] sm:$0xf] }
 0x290   :  { %v796_v57 = vadd.f32 %v794_v53, %v777_v51  ;;  %v797_v58 = vadd.f32 %v795_v43, %v778_v24  ;;  %v922_v54 = vld [vmem:[%s1565_s10] sm:$0xf]  ;;  %s1139_s10 = smov [#allocation2]  }
 0x291   :  { %v822_v61 = vpop.permute.xlu0 %821  ;;  %s1015_s11 = sshll.u32 %s1139_s10, 4  ;;  %s1016_s11 = int_to_ptr.vmem [resolvable:$true] %s1015_s11 }
 0x292   :  { %v815_v49 = vadd.f32 %v813_v59, %v796_v57  ;;  %v816_v4 = vadd.f32 %v814_v60, %v797_v58  ;;  %v832_v52 = vmul.f32 %v827_v56, %v822_v61  ;;  %v833_v15 = vmul.f32 %v831_v55, %v822_v61  ;;  %v841_v7 = vpop.permute.xlu1 %840  ;;  %p1117_p1 = scmp.lt.s32.totalorder %s1016_s11, %s1016_s11 }
 0x293   :  { %v851_v12 = vmul.f32 %v846_v62, %v841_v7  ;;  %v852_v13 = vmul.f32 %v850_v5, %v841_v7 }
 0x294   :  { %v834_v10 = vadd.f32 %v832_v52, %v815_v49  ;;  %v835_v1 = vadd.f32 %v833_v15, %v816_v4 }
 0x295   :  { %v860_v14 = vpop.permute.xlu0 %859 }
 0x296   :  { %v853_v16 = vadd.f32 %v851_v12, %v834_v10  ;;  %v854_v17 = vadd.f32 %v852_v13, %v835_v1  ;;  %v870_v19 = vmul.f32 %v865_v48, %v860_v14  ;;  %v871_v21 = vmul.f32 %v869_v9, %v860_v14  ;;  %v879_v18 = vpop.permute.xlu1 %878 }
 0x297   :  { %v889_v28 = vmul.f32 %v884_v63, %v879_v18  ;;  %v890_v47 = vmul.f32 %v888_v2, %v879_v18 }
 0x298   :  { %v872_v45 = vadd.f32 %v870_v19, %v853_v16  ;;  %v873_v25 = vadd.f32 %v871_v21, %v854_v17 }
 0x29a   :  { %v891_v30 = vadd.f32 %v889_v28, %v872_v45  ;;  %v892_v31 = vadd.f32 %v890_v47, %v873_v25 }
 0x29c   :  { %v896_v32 = vsel %vm546_vm2, %v892_v31, 0.0  ;;  %v893_v33 = vsel %vm546_vm2, %v891_v30, 0.0  ;;  %v899_v34 = vmul.f32 %v891_v30, %v891_v30  ;;  %v900_v6 = vmul.f32 %v892_v31, %v892_v31 }
 0x29d   :  { %897 = vadd.xlane.f32.xlu1 %v896_v32  ;;  %894 = vadd.xlane.f32.xlu0 %v893_v33 }
 0x29e   :  { %v901_v8 = vsel %vm546_vm2, %v899_v34, 0.0  ;;  %v904_v11 = vsel %vm546_vm2, %v900_v6, 0.0 }
 0x2a1   :  { %902 = vadd.xlane.f32.xlu0 %v901_v8 }
 0x2a5   :  { %905 = vadd.xlane.f32.xlu0 %v904_v11 }
 0x2ae   :  { %221 = vperm.xlu1 %1075, %v218_v22  }
 0x326   :  { %v898_v36 = vpop.xlane.xlu1 %897  ;;  %v895_v37 = vpop.xlane.xlu0 %894 }
 0x327   :  { %v908_v23 = vsel %vm561_vm3, %v898_v36, 0.0  ;;  %v907_v38 = vsel %vm561_vm3, %v895_v37, 0.0 }
 0x328   :  { %v909_v0 = vadd.f32 %v908_v23, %v907_v38 }
 0x32a   :  { %v222_v35 = vpop.permute.xlu1 %221  ;;  %v903_v41 = vpop.xlane.xlu0 %902  ;;  %v913_v44 = vmul.f32 0.03125, %v909_v0 }
 0x32b   :  { %v295_v40 = vadd.f32 %v294_v20, %v222_v35  ;;  %v910_v27 = vsel %vm561_vm3, %v903_v41, 0.0 }
 0x32c   :  { %v915_v26 = vmul.f32 %v913_v44, %v913_v44  ;;  %v918_v58 = vsub.f32 %v891_v30, %v913_v44  ;;  %v919_v59 = vsub.f32 %v892_v31, %v913_v44 }
 0x32d   :  { %v298_v42 = vadd.f32 1.0, %v295_v40 }
 0x32e   :  { %v906_v46 = vpop.xlane.xlu0 %905 }
 0x32f   :  { %v911_v50 = vsel %vm561_vm3, %v906_v46, 0.0  ;;  %996 = vrot.lane.b32.xlu1 %v298_v42, %s1136_s14  ;;  %s1112_s14 = scalar_lea.vmem %s1016_s11, 128 }
 0x330   :  { %v912_v39 = vadd.f32 %v911_v50, %v910_v27  ;;  %p1113_p0 = scmp.ne.s32.totalorder %s1016_s11, %s1112_s14  ;;  %p1118_p2 = scmp.lt.s32.totalorder %s1112_s14, %s1112_s14 }
 0x332   :  { %v914_v51 = vmul.f32 0.03125, %v912_v39  ;;  %p1119_p3 = por %p1118_p2, %p1117_p1 }
 0x333   :  { %934 = vperm.xlu1 %1075, %v931_v3  }
 0x334   :  { %v916_v24 = vsub.f32 %v914_v51, %v915_v26  ;;  %p1120_p4 = pnand %p1119_p3, %p1113_p0 }
 0x336   :  { %v917_v53 = vmax.f32 %v916_v24, 0.0 }
 0x338   :  { %v920_v43 = vadd.f32 1e-05, %v917_v53 }
 0x33a   :  { %1102 = vrsqrt.f32 %v920_v43 }
 0x347   :  { %v1103_v55 = vpop.eup %1102 }
 0x348   :  { %v923_v56 = vmul.f32 %v1103_v55, %v922_v54 }
 0x34a   :  { %926 = vperm.xlu0 %1074, %v923_v56  }
 0x34e   :  { %999 = vperm.xlu0 %1074, %v298_v42  }
 0x3a1   :  { %v997_v57 = vpop.permute.xlu1 %996 }
 0x3a2   :  { %1003 = vperm.xlu1 %1075, %v997_v57  }
 0x3ae   :  { %v935_v5 = vpop.permute.xlu1 %934 }
 0x3c5   :  { %v927_v60 = vpop.permute.xlu0 %926 }
 0x3c6   :  { %v929_v61 = vmul.f32 %v927_v60, %v918_v58  ;;  %v930_v62 = vmul.f32 %v927_v60, %v919_v59 }
 0x3c8   :  { %v937_v49 = vadd.f32 %v935_v5, %v929_v61  ;;  %v938_v4 = vadd.f32 %v935_v5, %v930_v62 }
 0x3c9   :  { %v1000_v50 = vpop.permute.xlu0 %999 }
 0x3ca   :  { %v939_v52 = vand.u32 2147483647, %v937_v49  ;;  %v940_v15 = vand.u32 2147483647, %v938_v4  ;;  %v971_v1 = vmul.f32 -0.5, %v937_v49  ;;  %v972_v8 = vmul.f32 -0.5, %v938_v4 }
 0x3cb   :  { %vm983_vm12 = vcmp.lt.f32.partialorder %v937_v49, 0.0  ;;  %v989_v42 = vmul.f32 0.5, %v937_v49  ;;  %vm984_vm13 = vcmp.lt.f32.partialorder %v938_v4, 0.0  ;;  %v990_v56 = vmul.f32 0.5, %v938_v4 }
 0x3cc   :  { %v941_v7 = vmul.f32 0.23164189, %v939_v52  ;;  %v942_v9 = vmul.f32 0.23164189, %v940_v15  ;;  %v973_v16 = vmul.f32 %v971_v1, %v937_v49  ;;  %v974_v22 = vmul.f32 %v972_v8, %v938_v4 }
 0x3ce   :  { %v943_v48 = vadd.f32 1.0, %v941_v7  ;;  %v944_v10 = vadd.f32 1.0, %v942_v9  ;;  %v975_v18 = vmul.f32 1.442695, %v973_v16  ;;  %v977_v38 = vmul.f32 1.442695, %v974_v22 }
 0x3d0   :  { %1104 = vrcp.f32 %v943_v48 }
 0x3d1   :  { %1106 = vrcp.f32 %v944_v10 }
 0x3d2   :  { %1108 = vpow2.f32 %v975_v18 }
 0x3d3   :  { %1110 = vpow2.f32 %v977_v38 }
 0x3dd   :  { %v1105_v12 = vpop.eup %1104 }
 0x3de   :  { %v1107_v13 = vpop.eup %1106  ;;  %v947_v14 = vmul.f32 %v1105_v12, %v943_v48 }
 0x3df   :  { %v948_v63 = vmul.f32 %v1107_v13, %v944_v10  ;;  %v1109_v36 = vpop.eup %1108 }
 0x3e0   :  { %v949_v2 = vsub.f32 2.0, %v947_v14  ;;  %v1111_v51 = vpop.eup %1110 }
 0x3e1   :  { %v950_v17 = vsub.f32 2.0, %v948_v63 }
 0x3e2   :  { %v951_v19 = vmul.f32 %v1105_v12, %v949_v2 }
 0x3e3   :  { %v952_v21 = vmul.f32 %v1107_v13, %v950_v17 }
 0x3e4   :  { %v953_v45 = vmul.f32 1.0614054, %v951_v19 }
 0x3e5   :  { %v954_v25 = vmul.f32 1.0614054, %v952_v21 }
 0x3e6   :  { %v955_v28 = vadd.f32 -1.4531521, %v953_v45 }
 0x3e7   :  { %v956_v30 = vadd.f32 -1.4531521, %v954_v25 }
 0x3e8   :  { %v957_v47 = vmul.f32 %v955_v28, %v951_v19 }
 0x3e9   :  { %v958_v33 = vmul.f32 %v956_v30, %v952_v21 }
 0x3ea   :  { %v959_v31 = vadd.f32 1.4214138, %v957_v47 }
 0x3eb   :  { %v960_v11 = vadd.f32 1.4214138, %v958_v33 }
 0x3ec   :  { %v961_v32 = vmul.f32 %v959_v31, %v951_v19 }
 0x3ed   :  { %v962_v37 = vmul.f32 %v960_v11, %v952_v21 }
 0x3ee   :  { %v963_v34 = vadd.f32 -0.28449672, %v961_v32 }
 0x3ef   :  { %v964_v35 = vadd.f32 -0.28449672, %v962_v37 }
 0x3f0   :  { %v965_v6 = vmul.f32 %v963_v34, %v951_v19 }
 0x3f1   :  { %v966_v46 = vmul.f32 %v964_v35, %v952_v21 }
 0x3f2   :  { %v967_v20 = vadd.f32 0.2548296, %v965_v6 }
 0x3f3   :  { %v968_v3 = vadd.f32 0.2548296, %v966_v46 }
 0x3f4   :  { %v969_v29 = vmul.f32 %v967_v20, %v951_v19 }
 0x3f5   :  { %v970_v26 = vmul.f32 %v968_v3, %v952_v21 }
 0x3f6   :  { %v979_v23 = vmul.f32 %v1109_v36, %v969_v29 }
 0x3f7   :  { %v980_v24 = vmul.f32 %v1111_v51, %v970_v26 }
 0x3f8   :  { %v981_v0 = vsub.f32 1.0, %v979_v23 }
 0x3f9   :  { %v982_v53 = vsub.f32 1.0, %v980_v24 }
 0x3fa   :  { %v985_v41 = vsub.f32 0.0, %v981_v0 }
 0x3fb   :  { %v986_v43 = vsub.f32 0.0, %v982_v53 }
 0x3fc   :  { %v987_v40 = vsel %vm983_vm12, %v985_v41, %v981_v0 }
 0x3fd   :  { %v991_v44 = vadd.f32 1.0, %v987_v40  ;;  %v988_v54 = vsel %vm984_vm13, %v986_v43, %v982_v53 }
 0x3fe   :  { %v992_v55 = vadd.f32 1.0, %v988_v54 }
 0x3ff   :  { %v993_v27 = vmul.f32 %v991_v44, %v989_v42 }
 0x400   :  { %v994_v57 = vmul.f32 %v992_v55, %v990_v56 }
 0x401   :  { %v1006_v39 = vmul.f32 %v1000_v50, %v993_v27 }
 0x403   :  { %1008 = vst.msk [vmem:[#allocation2] sm:$0xf] %vm546_vm2, %v1006_v39 }
 0x41d   :  { %v1004_v58 = vpop.permute.xlu1 %1003 }
 0x41e   :  { %v1007_v59 = vmul.f32 %v1004_v58, %v994_v57 }
 0x420   :  { %1009 = vst.msk [vmem:[#allocation2 + $0x4] sm:$0xf] %vm546_vm2, %v1007_v59 }
 0x421   :  { %1123 = shalt.err (!%p1120_p4)
}
 0x422   :  { %s1140_s19 = smov 64   ;;  %s1141_s20 = smov 4  }
 0x423   :  { %1021 = dma.vmem_to_hbm [thread:$0]  %s1016_s11, 128, %s1567_s12, [#allocation3], %s1140_s19, %s1140_s19, %s1141_s20  }
 0x424   :  { %1132 = dma.done.wait [#allocation3], 128  }
 0x425   :  { %1133 = vsyncadd [#allocation3], 4294967168 }
 0x426   :  { %1025 = vsyncpa [#allocation3], 1 }

</bundles_post_ra>
